<compile_context>
chip_gen: v7x
topology: tpu7x:2x2x1
jax: 0.10.0
libtpu: 0.0.40
codegen_flags: <defaults>
</compile_context>

<pallas_src>
import jax
import jax.numpy as jnp
from jax import lax
from jax.experimental import pallas as pl
from jax.experimental.pallas import tpu as pltpu


def _round_up(a, m):
    return (a + m - 1) // m * m


def _make_kernel(c, c_pad, n, n_pad, tn):
    """Build the two-phase kernel (statics captured by closure)."""

    def kernel(x_ref, wqk_ref, bqk_ref, wv_ref, bv_ref, o_ref, s_scr):
        ph = pl.program_id(1)        # 0: accumulate scores, 1: emit output
        t = pl.program_id(2)         # N-tile index
        nt = pl.num_programs(2)

        # ---- phase 0, first tile: zero the (Cp, Cp) score accumulator --------
        @pl.when(jnp.logical_and(ph == 0, t == 0))
        def _init():
            s_scr[...] = jnp.zeros_like(s_scr)

        # ---- phase 0: fused Q/K projection + score accumulation --------------
        @pl.when(ph == 0)
        def _scores():
            x = x_ref[0]                                              # (Cp, TN)
            qk = jnp.dot(wqk_ref[...], x,
                         preferred_element_type=jnp.float32) + bqk_ref[...]
            q = qk[:c_pad]                                            # (Cp, TN)
            k = qk[c_pad:]                                            # (Cp, TN)
            if n_pad != n:
                # Zero padded columns of K so the bias broadcast in the padded
                # region cannot contaminate the scores.
                col = t * tn + lax.broadcasted_iota(jnp.int32, (c_pad, tn), 1)
                k = jnp.where(col < n, k, 0.0)
            # q @ k^T without materializing a transpose of k.
            s_scr[...] += lax.dot_general(
                q, k, (((1,), (1,)), ((), ())),
                preferred_element_type=jnp.float32)

        # ---- phase 0, last tile: softmax over channels, in place -------------
        @pl.when(jnp.logical_and(ph == 0, t == nt - 1))
        def _softmax():
            s = s_scr[...]
            if c_pad != c:
                # Padded key-channels must not receive attention mass.
                col_c = lax.broadcasted_iota(jnp.int32, (c_pad, c_pad), 1)
                s = jnp.where(col_c < c, s, -1e30)
            s = s - jnp.max(s, axis=-1, keepdims=True)
            e = jnp.exp(s)
            s_scr[...] = e * pl.reciprocal(
                jnp.sum(e, axis=-1, keepdims=True), approx=True)

        # ---- phase 1: V projection (deferred) + P @ V, per N tile ------------
        @pl.when(ph == 1)
        def _output():
            x = x_ref[0]                                              # (Cp, TN)
            v = jnp.dot(wv_ref[...], x,
                        preferred_element_type=jnp.float32) + bv_ref[...]
            p_attn = s_scr[...]
            o_ref[0] = jnp.dot(p_attn.astype(jnp.bfloat16),
                               v.astype(jnp.bfloat16),
                               preferred_element_type=jnp.float32)

    return kernel


def _pallas_forward(x_p, wqk, bqk, wv_p, bv_p, *, c, n, tn, single_buffer_weights):
    b_sz, c_pad, n_pad = x_p.shape
    nt = n_pad // tn
    kernel = _make_kernel(c, c_pad, n, n_pad, tn)

    const_map = lambda b, ph, t: (0, 0)
    w_kwargs = {}
    if single_buffer_weights:
        # Grid-constant blocks: no double buffering needed -> VMEM headroom.
        w_kwargs = dict(pipeline_mode=pl.Buffered(1))

    in_specs = [
        pl.BlockSpec((1, c_pad, tn), lambda b, ph, t: (b, 0, t)),           # x tiles
        pl.BlockSpec((2 * c_pad, c_pad), const_map, **w_kwargs),            # fused Wq/Wk
        pl.BlockSpec((2 * c_pad, 1), const_map, **w_kwargs),                # fused bq/bk
        pl.BlockSpec((c_pad, c_pad), const_map, **w_kwargs),                # Wv
        pl.BlockSpec((c_pad, 1), const_map, **w_kwargs),                    # bv
    ]
    # Phase 0 parks on out-tile 0 (never written nor flushed while parked);
    # phase 1 writes out-tile t.  Tiles are multiples of 128 lanes -> unmasked stores.
    out_specs = pl.BlockSpec((1, c_pad, tn), lambda b, ph, t: (b, 0, t * ph))

    return pl.pallas_call(
        kernel,
        out_shape=jax.ShapeDtypeStruct((b_sz, c_pad, n_pad), jnp.float32),
        grid_spec=pltpu.PrefetchScalarGridSpec(
            num_scalar_prefetch=0,
            grid=(b_sz, 2, nt),
            in_specs=in_specs,
            out_specs=out_specs,
            scratch_shapes=[pltpu.VMEM((c_pad, c_pad), jnp.float32)],
        ),
        compiler_params=pltpu.CompilerParams(
            dimension_semantics=("parallel", "arbitrary", "arbitrary"),
            vmem_limit_bytes=64 * 1024 * 1024,
        ),
    )(x_p, wqk, bqk, wv_p, bv_p)


def convolutional_attention(x, wq, bq, wk, bk, wv, bv, *, max_n_tile=1024):
    """x: (B, C, H, W) float32; 1x1-conv params as in nn.Conv2d. Returns (B, C, H, W)."""
    B, C, H, W = x.shape
    N = H * W

    # Pad channels to a sublane multiple (>=8) and N to a lane multiple (128);
    # cap the N tile so per-step VMEM stays bounded on 64-MiB-VMEM parts (v7x).
    c_pad = _round_up(max(C, 8), 8)
    tn = min(_round_up(N, 128), max_n_tile)
    n_pad = _round_up(N, tn)

    x_flat = x.reshape(B, C, N).astype(jnp.float32)
    x_p = jnp.pad(x_flat, ((0, 0), (0, c_pad - C), (0, n_pad - N)))

    def pad_w(w):   # (C, C, 1, 1) -> (c_pad, c_pad)
        return jnp.pad(w.reshape(C, C), ((0, c_pad - C), (0, c_pad - C)))

    def pad_b(b_):  # (C,) -> (c_pad, 1)
        return jnp.pad(b_.reshape(C, 1), ((0, c_pad - C), (0, 0)))

    # Fused Q/K projection (one taller MXU matmul per tile); V stays separate
    # because it is projected after the softmax (phase 1).
    wqk = jnp.concatenate([pad_w(wq), pad_w(wk)], axis=0)        # (2*c_pad, c_pad)
    bqk = jnp.concatenate([pad_b(bq), pad_b(bk)], axis=0)        # (2*c_pad, 1)
    wv_p = pad_w(wv)
    bv_p = pad_b(bv)

    kwargs = dict(c=C, n=N, tn=tn)
    try:
        out_p = _pallas_forward(x_p, wqk, bqk, wv_p, bv_p,
                                single_buffer_weights=True, **kwargs)
    except Exception:
        # pipeline_mode=pl.Buffered(1) unsupported by this jax version:
        # fall back to default double-buffered weight blocks (tiny VMEM cost).
        out_p = _pallas_forward(x_p, wqk, bqk, wv_p, bv_p,
                                single_buffer_weights=False, **kwargs)

    return out_p[:, :C, :N].reshape(B, C, H, W)


def _init_conv_params(key, c):
    # Deterministic, PyTorch-like kaiming-uniform range for a 1x1 conv.
    kw, kb = jax.random.split(key)
    bound = 1.0 / jnp.sqrt(jnp.float32(c))
    w = jax.random.uniform(kw, (c, c, 1, 1), jnp.float32, -bound, bound)
    b = jax.random.uniform(kb, (c,), jnp.float32, -bound, bound)
    return w, b


def _reference(x, wq, bq, wk, bk, wv, bv):
    # Pure-JAX reference matching the PyTorch forward pass.
    B, C, H, W = x.shape
    xf = x.reshape(B, C, -1)
    q = jnp.einsum("oc,bcn->bon", wq.reshape(C, C), xf) + bq[None, :, None]
    k = jnp.einsum("oc,bcn->bon", wk.reshape(C, C), xf) + bk[None, :, None]
    v = jnp.einsum("oc,bcn->bon", wv.reshape(C, C), xf) + bv[None, :, None]
    s = jnp.einsum("bcn,bdn->bcd", q, k)
    p = jax.nn.softmax(s, axis=-1)
    return jnp.einsum("bcd,bdn->bcn", p, v).reshape(B, C, H, W)


if __name__ == "__main__":
    key = jax.random.PRNGKey(0)
    kx, k1, k2, k3 = jax.random.split(key, 4)

    B, C, H, W = 2, 4, 16, 16
    x = jax.random.normal(kx, (B, C, H, W), jnp.float32)
    wq, bq = _init_conv_params(k1, C)
    wk, bk = _init_conv_params(k2, C)
    wv, bv = _init_conv_params(k3, C)

    out = convolutional_attention(x, wq, bq, wk, bk, wv, bv)
    out = jax.block_until_ready(out)

    ref = _reference(x, wq, bq, wk, bk, wv, bv)
    assert out.shape == x.shape
    # Tolerance loosened (vs f32-only) for bf16 P@V inputs + approx reciprocal.
    assert jnp.allclose(out, ref, atol=2e-2, rtol=2e-2), float(jnp.max(jnp.abs(out - ref)))

    print("KERNEL_OK")
</pallas_src>

<mosaic_0001>
module attributes {stable_mosaic.version = 11 : i64} {
  func.func @kernel(%arg0: i32, %arg1: i32, %arg2: i32, %arg3: memref<1x8x256xf32, #tpu.memory_space<vmem>>, %arg4: memref<16x8xf32, #tpu.memory_space<vmem>>, %arg5: memref<16x1xf32, #tpu.memory_space<vmem>>, %arg6: memref<8x8xf32, #tpu.memory_space<vmem>>, %arg7: memref<8x1xf32, #tpu.memory_space<vmem>>, %arg8: memref<1x8x256xf32, #tpu.memory_space<vmem>>, %arg9: memref<8x8xf32, #tpu.memory_space<vmem>>) attributes {dimension_semantics = [#tpu.dimension_semantics<parallel>, #tpu.dimension_semantics<arbitrary>, #tpu.dimension_semantics<arbitrary>], iteration_bounds = array<i64: 2, 2, 1>, scalar_prefetch = 0 : i64, scratch_operands = 1 : i64, tpu.core_type = #tpu.core_type<tc>, window_params = [{transform_indices = @transform_0, window_bounds = array<i64: 1, 8, 256>}, {pipeline_mode = #tpu.pipeline_mode<synchronous>, transform_indices = @transform_1, window_bounds = array<i64: 16, 8>}, {pipeline_mode = #tpu.pipeline_mode<synchronous>, transform_indices = @transform_2, window_bounds = array<i64: 16, 1>}, {pipeline_mode = #tpu.pipeline_mode<synchronous>, transform_indices = @transform_3, window_bounds = array<i64: 8, 8>}, {pipeline_mode = #tpu.pipeline_mode<synchronous>, transform_indices = @transform_4, window_bounds = array<i64: 8, 1>}, {transform_indices = @transform_5, window_bounds = array<i64: 1, 8, 256>}]} {
    %c0_i32 = arith.constant 0 : i32
    %0 = arith.cmpi eq, %arg1, %c0_i32 : i32
    %c0_i32_0 = arith.constant 0 : i32
    %1 = arith.cmpi eq, %arg2, %c0_i32_0 : i32
    %2 = arith.andi %0, %1 : i1
    %3 = arith.extui %2 : i1 to i32
    %c0_i32_1 = arith.constant 0 : i32
    %4 = arith.cmpi ne, %3, %c0_i32_1 : i32
    scf.if %4 {
      %cst = arith.constant 0.000000e+00 : f32
      %16 = vector.broadcast %cst : f32 to vector<8x8xf32>
      %c0 = arith.constant 0 : index
      %c0_8 = arith.constant 0 : index
      %17 = vector.load %arg9[%c0, %c0_8] : memref<8x8xf32, #tpu.memory_space<vmem>>, vector<8x8xf32>
      tpu.vector_store %arg9[%c0, %c0_8], %16 {strides = array<i32>} : memref<8x8xf32, #tpu.memory_space<vmem>>, vector<8x8xf32>,
    } else {
    }
    %c0_i32_2 = arith.constant 0 : i32
    %5 = arith.cmpi eq, %arg1, %c0_i32_2 : i32
    %6 = arith.extui %5 : i1 to i32
    %c0_i32_3 = arith.constant 0 : i32
    %7 = arith.cmpi ne, %6, %c0_i32_3 : i32
    scf.if %7 {
      %c0 = arith.constant 0 : index
      %c0_8 = arith.constant 0 : index
      %c0_9 = arith.constant 0 : index
      %16 = vector.load %arg3[%c0, %c0_8, %c0_9] : memref<1x8x256xf32, #tpu.memory_space<vmem>>, vector<1x8x256xf32>
      %17 = vector.shape_cast %16 : vector<1x8x256xf32> to vector<8x256xf32>
      %c0_10 = arith.constant 0 : index
      %c0_11 = arith.constant 0 : index
      %18 = vector.load %arg4[%c0_10, %c0_11] : memref<16x8xf32, #tpu.memory_space<vmem>>, vector<16x8xf32>
      %cst = arith.constant dense<0.000000e+00> : vector<16x256xf32>
      %19 = tpu.matmul %18, %17, %cst {dimension_numbers = #tpu.dot_dimension_numbers<[1], [0], [0], [1], [0, 0, 1, 1], [], []>} : vector<16x8xf32>, vector<8x256xf32>, vector<16x256xf32> -> vector<16x256xf32>
      %c0_12 = arith.constant 0 : index
      %c0_13 = arith.constant 0 : index
      %20 = vector.load %arg5[%c0_12, %c0_13] : memref<16x1xf32, #tpu.memory_space<vmem>>, vector<16x1xf32>
      %21 = vector.broadcast %20 : vector<16x1xf32> to vector<16x256xf32>
      %22 = arith.addf %19, %21 : vector<16x256xf32>
      %23 = vector.extract_strided_slice %22 {offsets = [0, 0], sizes = [8, 256], strides = [1, 1]} : vector<16x256xf32> to vector<8x256xf32>
      %24 = vector.extract_strided_slice %22 {offsets = [8, 0], sizes = [8, 256], strides = [1, 1]} : vector<16x256xf32> to vector<8x256xf32>
      %c0_14 = arith.constant 0 : index
      %c0_15 = arith.constant 0 : index
      %25 = vector.load %arg9[%c0_14, %c0_15] : memref<8x8xf32, #tpu.memory_space<vmem>>, vector<8x8xf32>
      %cst_16 = arith.constant dense<0.000000e+00> : vector<8x8xf32>
      %26 = tpu.matmul %23, %24, %cst_16 {dimension_numbers = #tpu.dot_dimension_numbers<[1], [1], [0], [0], [0, 0, 1, 0], [], []>} : vector<8x256xf32>, vector<8x256xf32>, vector<8x8xf32> -> vector<8x8xf32>
      %27 = arith.addf %25, %26 : vector<8x8xf32>
      %c0_17 = arith.constant 0 : index
      %c0_18 = arith.constant 0 : index
      %28 = vector.load %arg9[%c0_17, %c0_18] : memref<8x8xf32, #tpu.memory_space<vmem>>, vector<8x8xf32>
      tpu.vector_store %arg9[%c0_17, %c0_18], %27 {strides = array<i32>} : memref<8x8xf32, #tpu.memory_space<vmem>>, vector<8x8xf32>,
    } else {
    }
    %c0_i32_4 = arith.constant 0 : i32
    %8 = arith.cmpi eq, %arg1, %c0_i32_4 : i32
    %c0_i32_5 = arith.constant 0 : i32
    %9 = arith.cmpi eq, %arg2, %c0_i32_5 : i32
    %10 = arith.andi %8, %9 : i1
    %11 = arith.extui %10 : i1 to i32
    %c0_i32_6 = arith.constant 0 : i32
    %12 = arith.cmpi ne, %11, %c0_i32_6 : i32
    scf.if %12 {
      %c0 = arith.constant 0 : index
      %c0_8 = arith.constant 0 : index
      %16 = vector.load %arg9[%c0, %c0_8] : memref<8x8xf32, #tpu.memory_space<vmem>>, vector<8x8xf32>
      %17 = tpu.iota {dimensions = array<i32: 1>} : vector<8x8xi32>
      %c4_i32 = arith.constant 4 : i32
      %18 = vector.broadcast %c4_i32 : i32 to vector<8x8xi32>
      %19 = arith.cmpi slt, %17, %18 : vector<8x8xi32>
      %cst = arith.constant -1.000000e+30 : f32
      %20 = vector.broadcast %cst : f32 to vector<8x8xf32>
      %21 = arith.select %19, %16, %20 : vector<8x8xi1>, vector<8x8xf32>
      %cst_9 = arith.constant dense<0xFF800000> : vector<8xf32>
      %22 = vector.multi_reduction <maximumf>, %21, %cst_9 [1] : vector<8x8xf32> to vector<8xf32>
      %23 = vector.shape_cast %22 : vector<8xf32> to vector<8x1xf32>
      %24 = vector.broadcast %23 : vector<8x1xf32> to vector<8x8xf32>
      %25 = arith.subf %21, %24 : vector<8x8xf32>
      %26 = math.exp %25 : vector<8x8xf32>
      %cst_10 = arith.constant dense<0.000000e+00> : vector<8xf32>
      %27 = vector.multi_reduction <add>, %26, %cst_10 [1] : vector<8x8xf32> to vector<8xf32>
      %28 = vector.shape_cast %27 : vector<8xf32> to vector<8x1xf32>
      %29 = tpu.reciprocal %28 {approx = true} : vector<8x1xf32> -> vector<8x1xf32>
      %30 = vector.broadcast %29 : vector<8x1xf32> to vector<8x8xf32>
      %31 = arith.mulf %26, %30 : vector<8x8xf32>
      %c0_11 = arith.constant 0 : index
      %c0_12 = arith.constant 0 : index
      %32 = vector.load %arg9[%c0_11, %c0_12] : memref<8x8xf32, #tpu.memory_space<vmem>>, vector<8x8xf32>
      tpu.vector_store %arg9[%c0_11, %c0_12], %31 {strides = array<i32>} : memref<8x8xf32, #tpu.memory_space<vmem>>, vector<8x8xf32>,
    } else {
    }
    %c1_i32 = arith.constant 1 : i32
    %13 = arith.cmpi eq, %arg1, %c1_i32 : i32
    %14 = arith.extui %13 : i1 to i32
    %c0_i32_7 = arith.constant 0 : i32
    %15 = arith.cmpi ne, %14, %c0_i32_7 : i32
    scf.if %15 {
      %c0 = arith.constant 0 : index
      %c0_8 = arith.constant 0 : index
      %c0_9 = arith.constant 0 : index
      %16 = vector.load %arg3[%c0, %c0_8, %c0_9] : memref<1x8x256xf32, #tpu.memory_space<vmem>>, vector<1x8x256xf32>
      %17 = vector.shape_cast %16 : vector<1x8x256xf32> to vector<8x256xf32>
      %c0_10 = arith.constant 0 : index
      %c0_11 = arith.constant 0 : index
      %18 = vector.load %arg6[%c0_10, %c0_11] : memref<8x8xf32, #tpu.memory_space<vmem>>, vector<8x8xf32>
      %cst = arith.constant dense<0.000000e+00> : vector<8x256xf32>
      %19 = tpu.matmul %18, %17, %cst {dimension_numbers = #tpu.dot_dimension_numbers<[1], [0], [0], [1], [0, 0, 1, 1], [], []>} : vector<8x8xf32>, vector<8x256xf32>, vector<8x256xf32> -> vector<8x256xf32>
      %c0_12 = arith.constant 0 : index
      %c0_13 = arith.constant 0 : index
      %20 = vector.load %arg7[%c0_12, %c0_13] : memref<8x1xf32, #tpu.memory_space<vmem>>, vector<8x1xf32>
      %21 = vector.broadcast %20 : vector<8x1xf32> to vector<8x256xf32>
      %22 = arith.addf %19, %21 : vector<8x256xf32>
      %c0_14 = arith.constant 0 : index
      %c0_15 = arith.constant 0 : index
      %23 = vector.load %arg9[%c0_14, %c0_15] : memref<8x8xf32, #tpu.memory_space<vmem>>, vector<8x8xf32>
      %24 = arith.truncf %23 : vector<8x8xf32> to vector<8x8xbf16>
      %25 = arith.truncf %22 : vector<8x256xf32> to vector<8x256xbf16>
      %cst_16 = arith.constant dense<0.000000e+00> : vector<8x256xf32>
      %26 = tpu.matmul %24, %25, %cst_16 {dimension_numbers = #tpu.dot_dimension_numbers<[1], [0], [0], [1], [0, 0, 1, 1], [], []>} : vector<8x8xbf16>, vector<8x256xbf16>, vector<8x256xf32> -> vector<8x256xf32>
      %c0_17 = arith.constant 0 : index
      %c0_18 = arith.constant 0 : index
      %c0_19 = arith.constant 0 : index
      %27 = vector.load %arg8[%c0_17, %c0_18, %c0_19] : memref<1x8x256xf32, #tpu.memory_space<vmem>>, vector<1x8x256xf32>
      %28 = vector.shape_cast %27 : vector<1x8x256xf32> to vector<8x256xf32>
      %29 = vector.shape_cast %26 : vector<8x256xf32> to vector<1x8x256xf32>
      tpu.vector_store %arg8[%c0_17, %c0_18, %c0_19], %29 {strides = array<i32>} : memref<1x8x256xf32, #tpu.memory_space<vmem>>, vector<1x8x256xf32>,
    } else {
    }
    return
  }
  func.func @transform_0(%arg0: i32, %arg1: i32, %arg2: i32) -> (i32, i32, i32) {
    %c0_i32 = arith.constant 0 : i32
    %c0_i32_0 = arith.constant 0 : i32
    return %arg0, %c0_i32, %arg2 : i32, i32, i32
  }
  func.func @transform_1(%arg0: i32, %arg1: i32, %arg2: i32) -> (i32, i32) {
    %c0_i32 = arith.constant 0 : i32
    %c0_i32_0 = arith.constant 0 : i32
    %c0_i32_1 = arith.constant 0 : i32
    return %c0_i32, %c0_i32_0 : i32, i32
  }
  func.func @transform_2(%arg0: i32, %arg1: i32, %arg2: i32) -> (i32, i32) {
    %c0_i32 = arith.constant 0 : i32
    %c0_i32_0 = arith.constant 0 : i32
    %c0_i32_1 = arith.constant 0 : i32
    return %c0_i32, %c0_i32_0 : i32, i32
  }
  func.func @transform_3(%arg0: i32, %arg1: i32, %arg2: i32) -> (i32, i32) {
    %c0_i32 = arith.constant 0 : i32
    %c0_i32_0 = arith.constant 0 : i32
    %c0_i32_1 = arith.constant 0 : i32
    return %c0_i32, %c0_i32_0 : i32, i32
  }
  func.func @transform_4(%arg0: i32, %arg1: i32, %arg2: i32) -> (i32, i32) {
    %c0_i32 = arith.constant 0 : i32
    %c0_i32_0 = arith.constant 0 : i32
    %c0_i32_1 = arith.constant 0 : i32
    return %c0_i32, %c0_i32_0 : i32, i32
  }
  func.func @transform_5(%arg0: i32, %arg1: i32, %arg2: i32) -> (i32, i32, i32) {
    %0 = arith.muli %arg2, %arg1 : i32
    %c0_i32 = arith.constant 0 : i32
    %c0_i32_0 = arith.constant 0 : i32
    return %arg0, %c0_i32, %0 : i32, i32, i32
  }
}

module attributes {stable_mosaic.version = 11 : i64} {
  func.func @kernel(%arg0: i32, %arg1: i32, %arg2: i32, %arg3: memref<1x8x256xf32, #tpu.memory_space<vmem>>, %arg4: memref<16x8xf32, #tpu.memory_space<vmem>>, %arg5: memref<16x1xf32, #tpu.memory_space<vmem>>, %arg6: memref<8x8xf32, #tpu.memory_space<vmem>>, %arg7: memref<8x1xf32, #tpu.memory_space<vmem>>, %arg8: memref<1x8x256xf32, #tpu.memory_space<vmem>>, %arg9: memref<8x8xf32, #tpu.memory_space<vmem>>) attributes {dimension_semantics = [#tpu.dimension_semantics<parallel>, #tpu.dimension_semantics<arbitrary>, #tpu.dimension_semantics<arbitrary>], iteration_bounds = array<i64: 2, 2, 1>, scalar_prefetch = 0 : i64, scratch_operands = 1 : i64, tpu.core_type = #tpu.core_type<tc>, window_params = [{transform_indices = @transform_0, window_bounds = array<i64: 1, 8, 256>}, {pipeline_mode = #tpu.pipeline_mode<synchronous>, transform_indices = @transform_1, window_bounds = array<i64: 16, 8>}, {pipeline_mode = #tpu.pipeline_mode<synchronous>, transform_indices = @transform_2, window_bounds = array<i64: 16, 1>}, {pipeline_mode = #tpu.pipeline_mode<synchronous>, transform_indices = @transform_3, window_bounds = array<i64: 8, 8>}, {pipeline_mode = #tpu.pipeline_mode<synchronous>, transform_indices = @transform_4, window_bounds = array<i64: 8, 1>}, {transform_indices = @transform_5, window_bounds = array<i64: 1, 8, 256>}]} {
    %c0_i32 = arith.constant 0 : i32
    %0 = arith.cmpi eq, %arg1, %c0_i32 : i32
    %c0_i32_0 = arith.constant 0 : i32
    %1 = arith.cmpi eq, %arg2, %c0_i32_0 : i32
    %2 = arith.andi %0, %1 : i1
    %3 = arith.extui %2 : i1 to i32
    %c0_i32_1 = arith.constant 0 : i32
    %4 = arith.cmpi ne, %3, %c0_i32_1 : i32
    scf.if %4 {
      %cst = arith.constant 0.000000e+00 : f32
      %16 = vector.broadcast %cst : f32 to vector<8x8xf32>
      %c0 = arith.constant 0 : index
      %c0_8 = arith.constant 0 : index
      %17 = vector.load %arg9[%c0, %c0_8] : memref<8x8xf32, #tpu.memory_space<vmem>>, vector<8x8xf32>
      tpu.vector_store %arg9[%c0, %c0_8], %16 {strides = array<i32>} : memref<8x8xf32, #tpu.memory_space<vmem>>, vector<8x8xf32>,
    } else {
    }
    %c0_i32_2 = arith.constant 0 : i32
    %5 = arith.cmpi eq, %arg1, %c0_i32_2 : i32
    %6 = arith.extui %5 : i1 to i32
    %c0_i32_3 = arith.constant 0 : i32
    %7 = arith.cmpi ne, %6, %c0_i32_3 : i32
    scf.if %7 {
      %c0 = arith.constant 0 : index
      %c0_8 = arith.constant 0 : index
      %c0_9 = arith.constant 0 : index
      %16 = vector.load %arg3[%c0, %c0_8, %c0_9] : memref<1x8x256xf32, #tpu.memory_space<vmem>>, vector<1x8x256xf32>
      %17 = vector.shape_cast %16 : vector<1x8x256xf32> to vector<8x256xf32>
      %c0_10 = arith.constant 0 : index
      %c0_11 = arith.constant 0 : index
      %18 = vector.load %arg4[%c0_10, %c0_11] : memref<16x8xf32, #tpu.memory_space<vmem>>, vector<16x8xf32>
      %cst = arith.constant dense<0.000000e+00> : vector<16x256xf32>
      %19 = tpu.matmul %18, %17, %cst {dimension_numbers = #tpu.dot_dimension_numbers<[1], [0], [0], [1], [0, 0, 1, 1], [], []>} : vector<16x8xf32>, vector<8x256xf32>, vector<16x256xf32> -> vector<16x256xf32>
      %c0_12 = arith.constant 0 : index
      %c0_13 = arith.constant 0 : index
      %20 = vector.load %arg5[%c0_12, %c0_13] : memref<16x1xf32, #tpu.memory_space<vmem>>, vector<16x1xf32>
      %21 = vector.broadcast %20 : vector<16x1xf32> to vector<16x256xf32>
      %22 = arith.addf %19, %21 : vector<16x256xf32>
      %23 = vector.extract_strided_slice %22 {offsets = [0, 0], sizes = [8, 256], strides = [1, 1]} : vector<16x256xf32> to vector<8x256xf32>
      %24 = vector.extract_strided_slice %22 {offsets = [8, 0], sizes = [8, 256], strides = [1, 1]} : vector<16x256xf32> to vector<8x256xf32>
      %c0_14 = arith.constant 0 : index
      %c0_15 = arith.constant 0 : index
      %25 = vector.load %arg9[%c0_14, %c0_15] : memref<8x8xf32, #tpu.memory_space<vmem>>, vector<8x8xf32>
      %cst_16 = arith.constant dense<0.000000e+00> : vector<8x8xf32>
      %26 = tpu.matmul %23, %24, %cst_16 {dimension_numbers = #tpu.dot_dimension_numbers<[1], [1], [0], [0], [0, 0, 1, 0], [], []>} : vector<8x256xf32>, vector<8x256xf32>, vector<8x8xf32> -> vector<8x8xf32>
      %27 = arith.addf %25, %26 : vector<8x8xf32>
      %c0_17 = arith.constant 0 : index
      %c0_18 = arith.constant 0 : index
      %28 = vector.load %arg9[%c0_17, %c0_18] : memref<8x8xf32, #tpu.memory_space<vmem>>, vector<8x8xf32>
      tpu.vector_store %arg9[%c0_17, %c0_18], %27 {strides = array<i32>} : memref<8x8xf32, #tpu.memory_space<vmem>>, vector<8x8xf32>,
    } else {
    }
    %c0_i32_4 = arith.constant 0 : i32
    %8 = arith.cmpi eq, %arg1, %c0_i32_4 : i32
    %c0_i32_5 = arith.constant 0 : i32
    %9 = arith.cmpi eq, %arg2, %c0_i32_5 : i32
    %10 = arith.andi %8, %9 : i1
    %11 = arith.extui %10 : i1 to i32
    %c0_i32_6 = arith.constant 0 : i32
    %12 = arith.cmpi ne, %11, %c0_i32_6 : i32
    scf.if %12 {
      %c0 = arith.constant 0 : index
      %c0_8 = arith.constant 0 : index
      %16 = vector.load %arg9[%c0, %c0_8] : memref<8x8xf32, #tpu.memory_space<vmem>>, vector<8x8xf32>
      %17 = tpu.iota {dimensions = array<i32: 1>} : vector<8x8xi32>
      %c4_i32 = arith.constant 4 : i32
      %18 = vector.broadcast %c4_i32 : i32 to vector<8x8xi32>
      %19 = arith.cmpi slt, %17, %18 : vector<8x8xi32>
      %cst = arith.constant -1.000000e+30 : f32
      %20 = vector.broadcast %cst : f32 to vector<8x8xf32>
      %21 = arith.select %19, %16, %20 : vector<8x8xi1>, vector<8x8xf32>
      %cst_9 = arith.constant dense<0xFF800000> : vector<8xf32>
      %22 = vector.multi_reduction <maximumf>, %21, %cst_9 [1] : vector<8x8xf32> to vector<8xf32>
      %23 = vector.shape_cast %22 : vector<8xf32> to vector<8x1xf32>
      %24 = vector.broadcast %23 : vector<8x1xf32> to vector<8x8xf32>
      %25 = arith.subf %21, %24 : vector<8x8xf32>
      %26 = math.exp %25 : vector<8x8xf32>
      %cst_10 = arith.constant dense<0.000000e+00> : vector<8xf32>
      %27 = vector.multi_reduction <add>, %26, %cst_10 [1] : vector<8x8xf32> to vector<8xf32>
      %28 = vector.shape_cast %27 : vector<8xf32> to vector<8x1xf32>
      %29 = tpu.reciprocal %28 {approx = true} : vector<8x1xf32> -> vector<8x1xf32>
      %30 = vector.broadcast %29 : vector<8x1xf32> to vector<8x8xf32>
      %31 = arith.mulf %26, %30 : vector<8x8xf32>
      %c0_11 = arith.constant 0 : index
      %c0_12 = arith.constant 0 : index
      %32 = vector.load %arg9[%c0_11, %c0_12] : memref<8x8xf32, #tpu.memory_space<vmem>>, vector<8x8xf32>
      tpu.vector_store %arg9[%c0_11, %c0_12], %31 {strides = array<i32>} : memref<8x8xf32, #tpu.memory_space<vmem>>, vector<8x8xf32>,
    } else {
    }
    %c1_i32 = arith.constant 1 : i32
    %13 = arith.cmpi eq, %arg1, %c1_i32 : i32
    %14 = arith.extui %13 : i1 to i32
    %c0_i32_7 = arith.constant 0 : i32
    %15 = arith.cmpi ne, %14, %c0_i32_7 : i32
    scf.if %15 {
      %c0 = arith.constant 0 : index
      %c0_8 = arith.constant 0 : index
      %c0_9 = arith.constant 0 : index
      %16 = vector.load %arg3[%c0, %c0_8, %c0_9] : memref<1x8x256xf32, #tpu.memory_space<vmem>>, vector<1x8x256xf32>
      %17 = vector.shape_cast %16 : vector<1x8x256xf32> to vector<8x256xf32>
      %c0_10 = arith.constant 0 : index
      %c0_11 = arith.constant 0 : index
      %18 = vector.load %arg6[%c0_10, %c0_11] : memref<8x8xf32, #tpu.memory_space<vmem>>, vector<8x8xf32>
      %cst = arith.constant dense<0.000000e+00> : vector<8x256xf32>
      %19 = tpu.matmul %18, %17, %cst {dimension_numbers = #tpu.dot_dimension_numbers<[1], [0], [0], [1], [0, 0, 1, 1], [], []>} : vector<8x8xf32>, vector<8x256xf32>, vector<8x256xf32> -> vector<8x256xf32>
      %c0_12 = arith.constant 0 : index
      %c0_13 = arith.constant 0 : index
      %20 = vector.load %arg7[%c0_12, %c0_13] : memref<8x1xf32, #tpu.memory_space<vmem>>, vector<8x1xf32>
      %21 = vector.broadcast %20 : vector<8x1xf32> to vector<8x256xf32>
      %22 = arith.addf %19, %21 : vector<8x256xf32>
      %c0_14 = arith.constant 0 : index
      %c0_15 = arith.constant 0 : index
      %23 = vector.load %arg9[%c0_14, %c0_15] : memref<8x8xf32, #tpu.memory_space<vmem>>, vector<8x8xf32>
      %24 = arith.truncf %23 : vector<8x8xf32> to vector<8x8xbf16>
      %25 = arith.truncf %22 : vector<8x256xf32> to vector<8x256xbf16>
      %cst_16 = arith.constant dense<0.000000e+00> : vector<8x256xf32>
      %26 = tpu.matmul %24, %25, %cst_16 {dimension_numbers = #tpu.dot_dimension_numbers<[1], [0], [0], [1], [0, 0, 1, 1], [], []>} : vector<8x8xbf16>, vector<8x256xbf16>, vector<8x256xf32> -> vector<8x256xf32>
      %c0_17 = arith.constant 0 : index
      %c0_18 = arith.constant 0 : index
      %c0_19 = arith.constant 0 : index
      %27 = vector.load %arg8[%c0_17, %c0_18, %c0_19] : memref<1x8x256xf32, #tpu.memory_space<vmem>>, vector<1x8x256xf32>
      %28 = vector.shape_cast %27 : vector<1x8x256xf32> to vector<8x256xf32>
      %29 = vector.shape_cast %26 : vector<8x256xf32> to vector<1x8x256xf32>
      tpu.vector_store %arg8[%c0_17, %c0_18, %c0_19], %29 {strides = array<i32>} : memref<1x8x256xf32, #tpu.memory_space<vmem>>, vector<1x8x256xf32>,
    } else {
    }
    return
  }
  func.func @transform_0(%arg0: i32, %arg1: i32, %arg2: i32) -> (i32, i32, i32) {
    %c0_i32 = arith.constant 0 : i32
    %c0_i32_0 = arith.constant 0 : i32
    return %arg0, %c0_i32, %arg2 : i32, i32, i32
  }
  func.func @transform_1(%arg0: i32, %arg1: i32, %arg2: i32) -> (i32, i32) {
    %c0_i32 = arith.constant 0 : i32
    %c0_i32_0 = arith.constant 0 : i32
    %c0_i32_1 = arith.constant 0 : i32
    return %c0_i32, %c0_i32_0 : i32, i32
  }
  func.func @transform_2(%arg0: i32, %arg1: i32, %arg2: i32) -> (i32, i32) {
    %c0_i32 = arith.constant 0 : i32
    %c0_i32_0 = arith.constant 0 : i32
    %c0_i32_1 = arith.constant 0 : i32
    return %c0_i32, %c0_i32_0 : i32, i32
  }
  func.func @transform_3(%arg0: i32, %arg1: i32, %arg2: i32) -> (i32, i32) {
    %c0_i32 = arith.constant 0 : i32
    %c0_i32_0 = arith.constant 0 : i32
    %c0_i32_1 = arith.constant 0 : i32
    return %c0_i32, %c0_i32_0 : i32, i32
  }
  func.func @transform_4(%arg0: i32, %arg1: i32, %arg2: i32) -> (i32, i32) {
    %c0_i32 = arith.constant 0 : i32
    %c0_i32_0 = arith.constant 0 : i32
    %c0_i32_1 = arith.constant 0 : i32
    return %c0_i32, %c0_i32_0 : i32, i32
  }
  func.func @transform_5(%arg0: i32, %arg1: i32, %arg2: i32) -> (i32, i32, i32) {
    %0 = arith.muli %arg2, %arg1 : i32
    %c0_i32 = arith.constant 0 : i32
    %c0_i32_0 = arith.constant 0 : i32
    return %arg0, %c0_i32, %0 : i32, i32, i32
  }
}

</mosaic_0001>

<bundles_post_ra>
// kernel: tpu_custom_call.1
= control target key start
LH: loop header
LB: loop body
LE: loop exit
PB: predicated region body
PF: predicated region fallthrough
CT: control target
= control target key end

     0   :  { %s1619_s0 = inlined_call_operand.hbm [shape: f32[2,8,256], index: 0, kind: input, shape index: {}]   ;;  %s1620_s1 = inlined_call_operand.hbm [shape: f32[16,8], index: 1, kind: input, shape index: {}]   ;;  %s1621_s2 = inlined_call_operand.hbm [shape: f32[16,1], index: 2, kind: input, shape index: {}]   ;;  %s1622_s3 = inlined_call_operand.hbm [shape: f32[8,8], index: 3, kind: input, shape index: {}]   ;;  %s1623_s4 = inlined_call_operand.hbm [shape: f32[8,1], index: 4, kind: input, shape index: {}]   ;;  %s1624_s5 = inlined_call_operand.hbm [shape: f32[2,8,256], index: 5, kind: output, shape index: {}]  }
   0x1   :  { %1631 = sst [smem:[#allocation17_spill]] %s1620_s1 }
   0x2   :  { %1632 = sst [smem:[#allocation18_spill]] %s1621_s2 }
   0x3   :  { %1633 = sst [smem:[#allocation19_spill]] %s1624_s5 }
   0x4   :  { %10 = vsyncpa [#allocation4], 0 }
   0x5   :  { %12 = vsyncpa [#allocation4 + $0x1], 0 }
   0x6   :  { %13 = vsyncpa [#allocation7], 0 }
   0x7   :  { %14 = vsyncpa [#allocation10], 0 }
   0x8   :  { %15 = vsyncpa [#allocation5], 0 }
   0x9   :  { %17 = vsyncpa [#allocation5 + $0x1], 0  ;;  %s1280_s18 = smov 0   ;;  %s1282_s19 = smov 0  }
   0xa   :  { %s1284_s20 = smov 0   ;;  %s1286_s21 = smov 0  }
   0xb   :  { %s1288_s22 = smov 0   ;;  %s1290_s23 = smov 0  }
   0xc   :  { %s1292_s24 = smov 0   ;;  %s1294_s25 = smov 0  }
   0xd LB: > { %s1625_s26 = sadd.s32 4294967295, %s1235_s25   ;;  %p823_p0 = scmp.ge.s32.totalorder %s1235_s25, 1  ;;  %s1235_s25 = sphi %s1294_s25, %s23_s25   ;;  %s1231_s24 = sphi %s1292_s24, %s1658_s24   ;;  %s1227_s23 = sphi %s1290_s23, %s1657_s23   ;;  %s1223_s22 = sphi %s1288_s22, %s1656_s22   ;;  %s1219_s21 = sphi %s1286_s21, %s1655_s21   ;;  %s1215_s20 = sphi %s1284_s20, %s1654_s20   ;;  %s1211_s19 = sphi %s1282_s19, %s1653_s19   ;;  %s1207_s18 = sphi %s1280_s18, %s1652_s18  }
   0xe   : > { %p1324_p1 = scmp.eq.s32.totalorder %s1625_s26, 0  ;;  %p189_p2 = scmp.lt.s32.totalorder %s1235_s25, 5 }
   0xf   : > { %s1237_s29 = smov [#allocation6]   ;;  %s1238_s7 = smov [#allocation9]  }
  0x10   : > { %s1634_s27 = scalar_select %p1324_p1, 1, 0 }
  0x11   : > { %p1329_p3 = pnand %p823_p0, %p189_p2  ;;  %s201_s30 = sshll.u32 %s1237_s29, 4  ;;  %s1333_s30 = int_to_ptr.vmem [resolvable:$true] %s201_s30 }
  0x12   : > { %s228_s8 = sshll.u32 %s1238_s7, 4  ;;  %s1239_s9 = smov [#allocation8]   ;;  %s1343_s8 = int_to_ptr.vmem [resolvable:$true] %s228_s8 }
  0x13   : > { %s1635_s28 = scalar_select %p1329_p3, 1, 0 }
  0x14   : > { %p875_p4 = pneg %p1329_p3  ;;  %s1345_s10 = sshll.u32 %s1239_s9, 4  ;;  %s215_s10 = int_to_ptr.vmem [resolvable:$true] %s1345_s10 }
  0x15   : > { %s1637_s1 = sld [smem:[#allocation17_spill]] }
  0x16   : > { %p1339_p5 = pnand %p875_p4, %p1324_p1 }
  0x18   : > { %p1355_p7 = pneg %p1339_p5 }
  0x1b   : > { %s987_s13 = scalar_lea.hbm %s1637_s1, 256 }
  0x1c   : > { %p988_p6 = scmp.ne.s32.totalorder %s1637_s1, %s987_s13  ;;  %p994_p10 = scmp.lt.u32.totalorder %s987_s13, %s1637_s1 }
  0x1e   : > { %p990_p8 = pnand %p1355_p7, %p988_p6 }
  0x20   : > { %p991_p9 = pneg %p990_p8 }
  0x22   : > { %p996_p11 = pnand %p994_p10, %p991_p9 }
  0x24   : > { %999 = shalt.err (!%p996_p11)
}
  0x25   : > { %s1000_s7 = scalar_lea.vmem %s1333_s30, 256  ;;  %p1008_p2 = scmp.lt.s32.totalorder %s1333_s30, %s1333_s30 }
  0x26   : > { %p1001_p12 = scmp.ne.s32.totalorder %s1333_s30, %s1000_s7  ;;  %p1009_p4 = scmp.lt.s32.totalorder %s1000_s7, %s1000_s7 }
  0x28   : > { %p1003_p13 = pnand %p1001_p12, %p1355_p7  ;;  %p1010_p6 = por %p1009_p4, %p1008_p2 }
  0x2a   : > { %p1004_p0 = pneg %p1003_p13 }
  0x2c   : > { %p1011_p8 = pnand %p1010_p6, %p1004_p0 }
  0x2e   : > { %1014 = shalt.err (!%p1011_p8)
}
  0x2f   : > { %s1240_s9 = smov 128   ;;  %s1241_s11 = smov 8  }
  0x30   : > { %878 = dma.hbm_to_vmem [thread:$0]  (!%p1339_p5), %s1637_s1, 256, %s1333_s30, [#allocation7], %s1240_s9, %s1240_s9, %s1241_s11  }
  0x31   : > { %s1015_s17 = scalar_lea.hbm %s1622_s3, 128 }
  0x32   : > { %p1016_p9 = scmp.ne.s32.totalorder %s1622_s3, %s1015_s17  ;;  %p1022_p12 = scmp.lt.u32.totalorder %s1015_s17, %s1622_s3 }
  0x34   : > { %p1018_p10 = pnand %p1016_p9, %p1355_p7 }
  0x36   : > { %p1019_p11 = pneg %p1018_p10 }
  0x38   : > { %p1024_p13 = pnand %p1022_p12, %p1019_p11 }
  0x3a   : > { %1027 = shalt.err (!%p1024_p13)
}
  0x3b   : > { %s1028_s30 = scalar_lea.vmem %s1343_s8, 128  ;;  %p1036_p6 = scmp.lt.s32.totalorder %s1343_s8, %s1343_s8 }
  0x3c   : > { %p1029_p0 = scmp.ne.s32.totalorder %s1343_s8, %s1028_s30  ;;  %p1037_p8 = scmp.lt.s32.totalorder %s1028_s30, %s1028_s30 }
  0x3e   : > { %p1031_p2 = pnand %p1029_p0, %p1355_p7  ;;  %p1038_p9 = por %p1037_p8, %p1036_p6 }
  0x40   : > { %p1032_p4 = pneg %p1031_p2 }
  0x42   : > { %p1039_p10 = pnand %p1038_p9, %p1032_p4 }
  0x44   : > { %1042 = shalt.err (!%p1039_p10)
}
  0x45   : > { %884 = dma.hbm_to_vmem [thread:$0]  (!%p1339_p5), %s1622_s3, 128, %s1343_s8, [#allocation10]  }
  0x46   : > { %s1639_s2 = sld [smem:[#allocation18_spill]] }
  0x4c   : > { %s1043_s14 = scalar_lea.hbm %s1639_s2, 256 }
  0x4d   : > { %p1044_p11 = scmp.ne.s32.totalorder %s1639_s2, %s1043_s14  ;;  %p1050_p0 = scmp.lt.u32.totalorder %s1043_s14, %s1639_s2 }
  0x4f   : > { %p1046_p12 = pnand %p1044_p11, %p1355_p7 }
  0x51   : > { %p1047_p13 = pneg %p1046_p12 }
  0x53   : > { %p1052_p2 = pnand %p1050_p0, %p1047_p13 }
  0x55   : > { %1055 = shalt.err (!%p1052_p2)
}
  0x56   : > { %s1056_s30 = scalar_lea.vmem %s215_s10, 256  ;;  %p1064_p9 = scmp.lt.s32.totalorder %s215_s10, %s215_s10 }
  0x57   : > { %p1057_p4 = scmp.ne.s32.totalorder %s215_s10, %s1056_s30  ;;  %p1065_p10 = scmp.lt.s32.totalorder %s1056_s30, %s1056_s30 }
  0x59   : > { %p1059_p6 = pnand %p1057_p4, %p1355_p7  ;;  %p1066_p3 = por %p1065_p10, %p1064_p9 }
  0x5b   : > { %p1060_p8 = pneg %p1059_p6 }
  0x5d   : > { %p1067_p1 = pnand %p1066_p3, %p1060_p8 }
  0x5f   : > { %1070 = shalt.err (!%p1067_p1)
}
  0x60   : > { %881 = dma.hbm_to_vmem [thread:$0]  (!%p1339_p5), %s1639_s2, 256, %s215_s10, [#allocation7], %s1240_s9, %s1240_s9, %s1241_s11  }
  0x61   : > { %s1242_s26 = smov [#allocation11]   ;;  %s1071_s15 = scalar_lea.hbm %s1623_s4, 128 }
  0x62   : > { %s239_s12 = sshll.u32 %s1242_s26, 4  ;;  %p1072_p1 = scmp.ne.s32.totalorder %s1623_s4, %s1071_s15  ;;  %s240_s12 = int_to_ptr.vmem [resolvable:$true] %s239_s12 }
  0x63   : > { %p1078_p12 = scmp.lt.u32.totalorder %s1071_s15, %s1623_s4 }
  0x64   : > { %p1074_p3 = pnand %p1072_p1, %p1355_p7 }
  0x66   : > { %p1075_p11 = pneg %p1074_p3 }
  0x68   : > { %p1080_p13 = pnand %p1078_p12, %p1075_p11 }
  0x6a   : > { %1083 = shalt.err (!%p1080_p13)
}
  0x6b   : > { %s1084_s10 = scalar_lea.vmem %s240_s12, 128  ;;  %p1092_p6 = scmp.lt.s32.totalorder %s240_s12, %s240_s12 }
  0x6c   : > { %p1085_p0 = scmp.ne.s32.totalorder %s240_s12, %s1084_s10  ;;  %p1093_p8 = scmp.lt.s32.totalorder %s1084_s10, %s1084_s10 }
  0x6e   : > { %p1087_p2 = pnand %p1085_p0, %p1355_p7  ;;  %p1094_p9 = por %p1093_p8, %p1092_p6 }
  0x70   : > { %p1088_p4 = pneg %p1087_p2 }
  0x72   : > { %p1095_p10 = pnand %p1094_p9, %p1088_p4 }
  0x74   : > { %1098 = shalt.err (!%p1095_p10)
}
  0x75   : > { %887 = dma.hbm_to_vmem [thread:$0]  (!%p1339_p5), %s1623_s4, 128, %s240_s12, [#allocation10]  }
  0x76   : > { %s822_s16 = sadd.s32 4294967294, %s1235_s25   ;;  %s38_s8 = sadd.s32 1, %s1227_s23 }
  0x77   : > { %p40_p7 = scmp.ge.s32.totalorder %s38_s8, 2  ;;  %s42_s6 = sadd.s32 1, %s1231_s24 }
  0x78   : > { %s51_s5 = sadd.s32 1, %s1215_s20  ;;  %p58_p1 = scmp.ne.s32.totalorder %s1215_s20, %s1211_s19 }
  0x79   : > { %s1660_s8 = smov (%p40_p7, %s38_s8), 0  ;;  %s1662_s6 = smov (!%p40_p7, %s42_s6), %s1231_s24 }
  0x7a   : > { %p59_p3 = scmp.eq.s32.totalorder %s1235_s25, 0  ;;  %p64_p11 = scmp.ne.s32.totalorder %s1211_s19, %s1207_s18 }
  0x7b   : > { %p44_p12 = scmp.ge.s32.totalorder %s1662_s6, 2  ;;  %s1640_s26 = sadd.s32 4294967295, %s1235_s25  }
  0x7c   : > { %p176_p13 = scmp.eq.s32.totalorder %s1640_s26, 3  ;;  %p1456_p5 = por %p59_p3, %p58_p1 }
  0x7d   : > { %p1642_p0 = scmp.ne.s32.totalorder %s1634_s27, 0  ;;  %s1664_s6 = smov (%p44_p12, %s1662_s6), 0 }
  0x7e   : > { %p1468_p4 = por %p176_p13, %p58_p1  ;;  %p182_p6 = scmp.eq.s32.totalorder %s822_s16, 3 }
  0x7f   : > { %p1462_p2 = por %p1642_p0, %p64_p11  ;;  %s46_s15 = ssub.s32 %s1231_s24, %s1664_s6 }
  0x80   : > { %s1644_s14 = scalar_select %p1468_p4, 1, 0 }
  0x81   : > { %p900_p8 = scmp.lt.s32.totalorder %s1235_s25, 4  ;;  %p49_p9 = scmp.eq.s32.totalorder %s46_s15, 0 }
  0x82   : > { %p1475_p10 = por %p182_p6, %p64_p11  ;;  %s250_s29 = sand.u32 1, %s1215_s20  }
  0x83   : > { %s852_s7 = sshll.u32 %s1231_s24, 8  ;;  %s829_s10 = sshll.u32 %s250_s29, 4 }
  0x84   : > { %s1645_s17 = scalar_select %p1475_p10, 1, 0 }
  0x85   : > { %s1482_s30 = scalar_select %p49_p9, %s1215_s20, %s51_s5  }
  0x86   : > { %s1487_s26 = scalar_lea.hbm %s1619_s0, %s852_s7  ;;  %s254_s16 = scalar_lea.vmem [#allocation3], %s829_s10 }
  0x87   : > { %s264_s15 = sshll.u32 %s254_s16, 4  ;;  %p1491_p7 = pnand %p900_p8, %p1456_p5  ;;  %s1495_s15 = int_to_ptr.vmem [resolvable:$true] %s264_s15 }
  0x88   : > { %s251_s5 = scalar_lea.sflag [#allocation4], %s250_s29  ;;  %s1099_s2 = scalar_lea.hbm %s1487_s26, 256 }
  0x89   : > { %p1100_p1 = scmp.ne.s32.totalorder %s1487_s26, %s1099_s2  ;;  %p1101_p3 = pneg %p1491_p7 }
  0x8a   : > { %s1104_s12 = scalar_lea.hbm %s1619_s0, 512  ;;  %p1105_p13 = scmp.lt.u32.totalorder %s1487_s26, %s1619_s0 }
  0x8b   : > { %p1102_p11 = pnand %p1101_p3, %p1100_p1  ;;  %p1106_p5 = scmp.lt.u32.totalorder %s1104_s12, %s1099_s2 }
  0x8c   : > { %p1108_p6 = scmp.lt.u32.totalorder %s1099_s2, %s1487_s26 }
  0x8d   : > { %p1103_p12 = pneg %p1102_p11  ;;  %p1107_p0 = por %p1106_p5, %p1105_p13 }
  0x8f   : > { %p1109_p8 = por %p1108_p6, %p1107_p0 }
  0x91   : > { %p1110_p9 = pnand %p1109_p8, %p1103_p12 }
  0x93   : > { %1113 = shalt.err (!%p1110_p9)
}
  0x94   : > { %s1114_s29 = scalar_lea.vmem %s1495_s15, 256  ;;  %s1243_s16 = smov [#allocation3]  }
  0x95   : > { %p1115_p1 = scmp.ne.s32.totalorder %s1495_s15, %s1114_s29  ;;  %s1119_s7 = sshll.u32 %s1243_s16, 4  ;;  %s1120_s7 = int_to_ptr.vmem [resolvable:$false] %s1119_s7 }
  0x96   : > { %s1121_s10 = scalar_lea.vmem %s1120_s7, 512  ;;  %p1122_p4 = scmp.lt.s32.totalorder %s1495_s15, %s1120_s7 }
  0x97   : > { %p1117_p11 = pnand %p1115_p1, %p1101_p3  ;;  %p1123_p13 = scmp.lt.s32.totalorder %s1121_s10, %s1114_s29 }
  0x99   : > { %p1118_p10 = pneg %p1117_p11  ;;  %p1124_p5 = por %p1123_p13, %p1122_p4 }
  0x9b   : > { %p1125_p0 = pnand %p1124_p5, %p1118_p10 }
  0x9d   : > { %1128 = shalt.err (!%p1125_p0)
}
  0x9e   : > { %891 = dma.hbm_to_vmem [thread:$0]  (!%p1491_p7), %s1487_s26, 256, %s1495_s15, %s251_s5  }
  0x9f   : > { %p1647_p12 = scmp.ne.s32.totalorder %s1635_s28, 0 }
  0xa0   : > { %s1525_s2 = sand.u32 (!%p1647_p12), 1, %s1211_s19  }
  0xa1   : > { %273 = sbr.rel (%p1647_p12) target bundleno = 1414 (0x586), region = 40  ;;  %s833_s12 = sshll.u32 (!%p1647_p12), %s1525_s2, 4 }
  0xa2   : > { %s276_s9 = scalar_lea.sflag (!%p1647_p12), [#allocation4], %s1525_s2  ;;  %s1529_s11 = scalar_lea.vmem (!%p1647_p12), [#allocation3], %s833_s12 }
  0xa8   : > { %1190 = dma.done.wait (%p1462_p2), %s276_s9, 256  }
  0xa9   : > { %1192 = vsyncadd (%p1462_p2), %s276_s9, 4294967040  ;;  %p1648_p4 = scmp.ne.s32.totalorder %s1634_s27, 0 }
  0xab   : > { %1194 = dma.done.wait (%p1648_p4), [#allocation7], 512  }
  0xac   : > { %1196 = vsyncadd (%p1648_p4), [#allocation7], 4294966784 }
  0xad   : > { %1198 = dma.done.wait (%p1648_p4), [#allocation10], 256  }
  0xae   : > { %1200 = vsyncadd (%p1648_p4), [#allocation10], 4294967040  ;;  %p326_p10 = scmp.eq.s32.totalorder %s1219_s21, 0  ;;  %s1544_s1 = scalar_lea.vmem [#allocation12], %s833_s12 }
  0xaf   : > { %vm332_vm0 = vcmask (%p326_p10), 64512   ;;  %v1244_v0 = vmov (%p326_p10), 0.0  }
  0xb0   : > { %331 = sbr.rel (!%p326_p10) target bundleno = 183 (0xb7), region = 64  ;;  %333 = vst.msk [vmem:[#allocation2] sm:$0xff] (%p326_p10), %vm332_vm0, %v1244_v0 }
  0xb7 PF: > { %p840_p2 = scmp.ne.s32.totalorder %s1219_s21, 0 }
  0xb8   : > { %v338_v1 = vld [vmem:[%s1529_s11 + $0x8] sm:$0xff] (!%p840_p2)  ;;  %v337_v2 = vld [vmem:[%s1529_s11] sm:$0xff] (!%p840_p2)  ;;  %vm353_vm1 = vcmask (!%p840_p2), 64512   ;;  %v1245_v4 = vmov (!%p840_p2), 0.0   ;;  %v1246_v6 = vmov (!%p840_p2), 0  }
  0xb9   : > { %336 = sbr.rel (%p840_p2) target bundleno = 625 (0x271), region = 68  ;;  %v339_v3 = vld [vmem:[#allocation6] sm:$0xff] (!%p840_p2)  ;;  %360 = vmatprep.subr.mxu0 (!%p840_p2), %v338_v1  ;;  %424 = vmatprep.mubr.f32.mxu0 (!%p840_p2), %v1245_v4  ;;  %v342_v5 = vld [vmem:[#allocation8 + $0x8] sm:$0xff] (!%p840_p2)  ;;  %v340_v7 = vld [vmem:[#allocation6 + $0x8] sm:$0xff] (!%p840_p2) }
  0xba   : > { %361 = vmatpush1.msra.mxu0 (!%p840_p2), %v337_v2  ;;  %981 = vset.pattern.permute.xlu0 (!%p840_p2), %v1246_v6  ;;  %v341_v8 = vld [vmem:[#allocation8] sm:$0xff] (!%p840_p2)  ;;  %v437_v19 = vld [vmem:[#allocation2] sm:$0xff] (!%p840_p2) }
  0xbb   : > { %841 = vmatmul.mubr.msk.f32.vlgmr.msra.gmra.mrb[0].mxu0 (!%p840_p2), %vm353_vm1, %v339_v3  ;;  %350 = vperm.xlu0 (!%p840_p2), %981, %v342_v5  }
  0xbc   : > { %430 = vmatprep.mubr.f32.mxu0 (!%p840_p2), %v1245_v4 }
  0xbf   : > { %842 = vmatmul.mubr.msk.f32.gmra.mrb[2].mxu0 (!%p840_p2), %vm353_vm1, %v340_v7  ;;  %345 = vperm.xlu0 (!%p840_p2), %981, %v341_v8  }
 0x13a   : > { %v351_v9 = vpop.permute.xlu0 %350 }
 0x13e   : > { %v346_v10 = vpop.permute.xlu0 %345 }
 0x18e   : > { %v426_v11 = vpop.f32.mrb[0].mxu0 }
 0x18f   : > { %v428_v12 = vpop.f32.mrb[1].mxu0  ;;  %v427_v18 = vadd.f32 %v426_v11, %v346_v10 }
 0x190   : > { %v429_v13 = vadd.f32 %v428_v12, %v346_v10 }
 0x192   : > { %v432_v14 = vpop.f32.mrb[2].mxu0  ;;  %502 = vmatprep.mubr.f32.mxu1 %v429_v13 }
 0x193   : > { %v434_v15 = vpop.f32.mrb[3].mxu0  ;;  %v433_v17 = vadd.f32 %v432_v14, %v351_v9 }
 0x194   : > { %v435_v16 = vadd.f32 %v434_v15, %v351_v9 }
 0x196   : > { %438 = vmatprep.subr.mxu1 %v435_v16 }
 0x197   : > { %439 = vmatpush1.xpose.msra.mxu1 %v433_v17 }
 0x19a   : > { %503 = vmatmul.mubr.f32.vlgmr.msra.gmra.mrb[0].mxu1 %v427_v18 }
 0x26d   : > { %v504_v20 = vpop.f32.mrb[0].mxu1 }
 0x26e   : > { %v508_v21 = vadd.f32 %v504_v20, %v437_v19  ;;  %v506_v22 = vpop.f32.mrb[1].mxu1 }
 0x270   : > { %509 = vst.msk [vmem:[#allocation2] sm:$0xff] %vm353_vm1, %v508_v21 }
 0x271 PF: > { %511 = sbr.rel (!%p326_p10) target bundleno = 948 (0x3b4), region = 72  ;;  %v513_v23 = vlaneseq (%p326_p10)  ;;  %vm517_vm2 = vcmask (%p326_p10), 64512  }
 0x273   : > { %v514_v25 = vand.u32 (%p326_p10), 127, %v513_v23 }
 0x275   : > { %vm515_vm3 = vcmp.lt.s32.totalorder (%p326_p10), %v514_v25, 4 }
 0x277   : > { %v512_v24 = vld [vmem:[#allocation2] sm:$0xff] (%p326_p10) }
 0x278   : > { %v516_v26 = vsel %vm515_vm3, %v512_v24, -1e+30 }
 0x279   : > { %v518_v27 = vsel %vm517_vm2, %v516_v26, -inf }
 0x27a   : > { %519 = vmax.xlane.f32.xlu0 %v518_v27 }
 0x307   : > { %v520_v28 = vpop.xlane.xlu0 %519 }
 0x308   : > { %v521_v29 = vsub.f32 %v516_v26, %v520_v28 }
 0x30a   : > { %v522_v30 = vmul.f32 1.442695, %v521_v29 }
 0x30c   : > { %982 = vpow2.f32 %v522_v30 }
 0x316   : > { %v983_v31 = vpop.eup %982 }
 0x317   : > { %v524_v32 = vsel %vm517_vm2, %v983_v31, 0.0 }
 0x318   : > { %525 = vadd.xlane.f32.xlu0 %v524_v32 }
 0x3a5   : > { %v526_v33 = vpop.xlane.xlu0 %525 }
 0x3a6   : > { %984 = vrcp.f32 %v526_v33 }
 0x3b0   : > { %v985_v34 = vpop.eup %984 }
 0x3b1   : > { %v528_v35 = vmul.f32 %v985_v34, %v983_v31 }
 0x3b3   : > { %529 = vst.msk [vmem:[#allocation2] sm:$0xff] %vm517_vm2, %v528_v35 }
 0x3b4 PF: > { %p843_p7 = scmp.ne.s32.totalorder %s1219_s21, 1 }
 0x3b5   : > { %v535_v36 = vld [vmem:[%s1529_s11 + $0x8] sm:$0xff] (!%p843_p7)  ;;  %v534_v37 = vld [vmem:[%s1529_s11] sm:$0xff] (!%p843_p7)  ;;  %vm543_vm4 = vcmask (!%p843_p7), 64512   ;;  %v1247_v39 = vmov (!%p843_p7), 0.0   ;;  %v1248_v41 = vmov (!%p843_p7), 0   ;;  %vm625_vm5 = vcmask (!%p843_p7), 1043456  }
 0x3b6   : > { %533 = sbr.rel (%p843_p7) target bundleno = 1388 (0x56c), region = 76  ;;  %v536_v38 = vld [vmem:[#allocation9] sm:$0xff] (!%p843_p7)  ;;  %547 = vmatprep.subr.mxu0 (!%p843_p7), %v535_v36  ;;  %611 = vmatprep.mubr.f32.mxu0 (!%p843_p7), %v1247_v39  ;;  %v537_v40 = vld [vmem:[#allocation11] sm:$0xff] (!%p843_p7) }
 0x3b7   : > { %548 = vmatpush1.msra.mxu0 (!%p843_p7), %v534_v37  ;;  %986 = vset.pattern.permute.xlu0 (!%p843_p7), %v1248_v41 }
 0x3b8   : > { %844 = vmatmul.mubr.msk.f32.vlgmr.msra.gmra.mrb[0].mxu0 (!%p843_p7), %vm543_vm4, %v536_v38  ;;  %540 = vperm.xlu0 (!%p843_p7), %986, %v537_v40  }
 0x3b9   : > { %664 = vmatprep.mubr.bf16.mxu1 (!%p843_p7), %v1248_v41 }
 0x3ba   : > { %v618_v48 = vld [vmem:[#allocation2] sm:$0xff] (!%p843_p7) }
 0x3bb   : > { %v619_v51 = vpack.c.bf16 (!%p843_p7), %v618_v48, %v618_v48 }
 0x437   : > { %v541_v42 = vpop.permute.xlu0 %540 }
 0x48b   : > { %v613_v43 = vpop.f32.mrb[0].mxu0 }
 0x48c   : > { %v614_v44 = vadd.f32 %v613_v43, %v541_v42  ;;  %v615_v45 = vpop.f32.mrb[1].mxu0 }
 0x48d   : > { %v616_v46 = vadd.f32 %v615_v45, %v541_v42 }
 0x48e   : > { %v620_v47 = vpack.c.bf16 %v614_v44, %v614_v44 }
 0x48f   : > { %v621_v49 = vpack.c.bf16 %v616_v46, %v616_v46 }
 0x490   : > { %v627_v50 = vsel %vm625_vm5, %v620_v47, 0 }
 0x491   : > { %845 = vmatprep.subr.msk.bf16.mxu1 %vm625_vm5, %v621_v49 }
 0x492   : > { %633 = vmatpush1.bf16.msra.mxu1 %v627_v50 }
 0x495   : > { %846 = vmatmul.mubr.msk.bf16.vlgmr.msra.gmra.mrb[0].mxu1 %vm543_vm4, %v619_v51 }
 0x568   : > { %v666_v52 = vpop.f32.mrb[0].mxu1 }
 0x569   : > { %673 = vst [vmem:[%s1544_s1] sm:$0xff] %v666_v52  ;;  %v668_v53 = vpop.f32.mrb[1].mxu1 }
 0x56a   : > { %674 = vst [vmem:[%s1544_s1 + $0x8] sm:$0xff] %v668_v53  ;;  %v670_v54 = vpop.f32.mrb[2].mxu1 }
 0x56b   : > { %v671_v55 = vpop.f32.mrb[3].mxu1 }
 0x56c PF: > { %s854_s21 = sshll.u32 %s1223_s22, 8  ;;  %s1649_s13 = sld [smem:[#allocation19_spill]] }
 0x56d   : > { %s693_s15 = sshll.u32 %s1544_s1, 4  ;;  %s676_s5 = scalar_lea.sflag [#allocation5], %s1525_s2  ;;  %s694_s15 = int_to_ptr.vmem [resolvable:$true] %s693_s15 }
 0x56e   : > { %s1129_s29 = scalar_lea.vmem %s694_s15, 256  ;;  %p1650_p6 = scmp.ne.s32.totalorder %s1644_s14, 0 }
 0x56f   : > { %p1130_p3 = scmp.ne.s32.totalorder %s694_s15, %s1129_s29  ;;  %s1249_s16 = smov [#allocation12]  }
 0x570   : > { %s1133_s7 = sshll.u32 %s1249_s16, 4  ;;  %s1134_s7 = int_to_ptr.vmem [resolvable:$false] %s1133_s7 }
 0x571   : > { %p1131_p8 = pnand %p1130_p3, %p1650_p6  ;;  %s1135_s10 = scalar_lea.vmem %s1134_s7, 512 }
 0x572   : > { %s1570_s26 = scalar_lea.hbm %s1649_s13, %s854_s21  ;;  %p1136_p1 = scmp.lt.s32.totalorder %s694_s15, %s1134_s7 }
 0x573   : > { %p1132_p9 = pneg %p1131_p8  ;;  %p1137_p11 = scmp.lt.s32.totalorder %s1135_s10, %s1129_s29 }
 0x575   : > { %p1138_p13 = por %p1137_p11, %p1136_p1 }
 0x577   : > { %p1139_p5 = pnand %p1138_p13, %p1132_p9 }
 0x579   : > { %1142 = shalt.err (!%p1139_p5)
}
 0x57a   : > { %s1143_s22 = scalar_lea.hbm %s1570_s26, 256  ;;  %s1147_s9 = scalar_lea.hbm %s1649_s13, 512 }
 0x57b   : > { %p1144_p0 = scmp.ne.s32.totalorder %s1570_s26, %s1143_s22  ;;  %p1148_p10 = scmp.lt.u32.totalorder %s1570_s26, %s1649_s13 }
 0x57c   : > { %p1149_p2 = scmp.lt.u32.totalorder %s1147_s9, %s1143_s22  ;;  %p1151_p3 = scmp.lt.u32.totalorder %s1143_s22, %s1570_s26 }
 0x57d   : > { %p1145_p12 = pnand %p1144_p0, %p1650_p6 }
 0x57e   : > { %p1150_p7 = por %p1149_p2, %p1148_p10 }
 0x57f   : > { %p1146_p4 = pneg %p1145_p12 }
 0x580   : > { %p1152_p8 = por %p1151_p3, %p1150_p7 }
 0x582   : > { %p1153_p9 = pnand %p1152_p8, %p1146_p4 }
 0x584   : > { %1156 = shalt.err (!%p1153_p9)
}
 0x585   : > { %873 = dma.vmem_to_hbm [thread:$0]  (%p1650_p6), %s694_s15, 256, %s1570_s26, %s676_s5  }
 0x586 PF: > { %p905_p1 = scmp.ge.s32.totalorder %s1235_s25, 2  ;;  %s705_s21 = sand.u32 1, %s1207_s18  }
 0x587   : > { %p1651_p11 = scmp.ne.s32.totalorder %s1645_s17, 0  ;;  %s706_s27 = scalar_lea.sflag [#allocation5], %s705_s21 }
 0x589   : > { %p893_p13 = pnand %p905_p1, %p1651_p11 }
 0x58b   : > { %1202 = dma.done.wait (!%p893_p13), %s706_s27, 256  }
 0x58c   : > { %1204 = vsyncadd (!%p893_p13), %s706_s27, 4294967040  ;;  %s23_s25 = sadd.s32 1, %s1235_s25   ;;  %s1652_s18 = smov %s1211_s19 }
 0x58d   : > { %p20_p5 = scmp.ge.s32.totalorder %s23_s25, 6   ;;  %s1653_s19 = smov %s1215_s20 }
 0x58e   : > { %s1654_s20 = smov %s1482_s30  ;;  %s1655_s21 = smov %s1227_s23 }
 0x58f   : > { %s1656_s22 = smov %s1231_s24  ;;  %s1657_s23 = smov %s1660_s8 }
 0x590   : > { %s1658_s24 = smov %s1664_s6  ;;  %22 = sbr.rel (!%p20_p5) target bundleno = 13 (0xd), region = 117 }
 0x597   :  { %711 = vsyncpa [#allocation4], 1 }
 0x598   :  { %713 = vsyncpa [#allocation4 + $0x1], 1 }
 0x599   :  { %714 = vsyncpa [#allocation7], 1 }
 0x59a   :  { %715 = vsyncpa [#allocation10], 1 }
 0x59b   :  { %716 = vsyncpa [#allocation5], 1 }
 0x59c   :  { %718 = vsyncpa [#allocation5 + $0x1], 1 }

// kernel: tpu_custom_call.1
= control target key start
LH: loop header
LB: loop body
LE: loop exit
PB: predicated region body
PF: predicated region fallthrough
CT: control target
= control target key end

     0   :  { %s1619_s0 = inlined_call_operand.hbm [shape: f32[2,8,256], index: 0, kind: input, shape index: {}]   ;;  %s1620_s1 = inlined_call_operand.hbm [shape: f32[16,8], index: 1, kind: input, shape index: {}]   ;;  %s1621_s2 = inlined_call_operand.hbm [shape: f32[16,1], index: 2, kind: input, shape index: {}]   ;;  %s1622_s3 = inlined_call_operand.hbm [shape: f32[8,8], index: 3, kind: input, shape index: {}]   ;;  %s1623_s4 = inlined_call_operand.hbm [shape: f32[8,1], index: 4, kind: input, shape index: {}]   ;;  %s1624_s5 = inlined_call_operand.hbm [shape: f32[2,8,256], index: 5, kind: output, shape index: {}]  }
   0x1   :  { %1631 = sst [smem:[#allocation17_spill]] %s1620_s1 }
   0x2   :  { %1632 = sst [smem:[#allocation18_spill]] %s1621_s2 }
   0x3   :  { %1633 = sst [smem:[#allocation19_spill]] %s1624_s5 }
   0x4   :  { %10 = vsyncpa [#allocation4], 0 }
   0x5   :  { %12 = vsyncpa [#allocation4 + $0x1], 0 }
   0x6   :  { %13 = vsyncpa [#allocation7], 0 }
   0x7   :  { %14 = vsyncpa [#allocation10], 0 }
   0x8   :  { %15 = vsyncpa [#allocation5], 0 }
   0x9   :  { %17 = vsyncpa [#allocation5 + $0x1], 0  ;;  %s1280_s18 = smov 0   ;;  %s1282_s19 = smov 0  }
   0xa   :  { %s1284_s20 = smov 0   ;;  %s1286_s21 = smov 0  }
   0xb   :  { %s1288_s22 = smov 0   ;;  %s1290_s23 = smov 0  }
   0xc   :  { %s1292_s24 = smov 0   ;;  %s1294_s25 = smov 0  }
   0xd LB: > { %s1625_s26 = sadd.s32 4294967295, %s1235_s25   ;;  %p823_p0 = scmp.ge.s32.totalorder %s1235_s25, 1  ;;  %s1235_s25 = sphi %s1294_s25, %s23_s25   ;;  %s1231_s24 = sphi %s1292_s24, %s1658_s24   ;;  %s1227_s23 = sphi %s1290_s23, %s1657_s23   ;;  %s1223_s22 = sphi %s1288_s22, %s1656_s22   ;;  %s1219_s21 = sphi %s1286_s21, %s1655_s21   ;;  %s1215_s20 = sphi %s1284_s20, %s1654_s20   ;;  %s1211_s19 = sphi %s1282_s19, %s1653_s19   ;;  %s1207_s18 = sphi %s1280_s18, %s1652_s18  }
   0xe   : > { %p1324_p1 = scmp.eq.s32.totalorder %s1625_s26, 0  ;;  %p189_p2 = scmp.lt.s32.totalorder %s1235_s25, 5 }
   0xf   : > { %s1237_s29 = smov [#allocation6]   ;;  %s1238_s7 = smov [#allocation9]  }
  0x10   : > { %s1634_s27 = scalar_select %p1324_p1, 1, 0 }
  0x11   : > { %p1329_p3 = pnand %p823_p0, %p189_p2  ;;  %s201_s30 = sshll.u32 %s1237_s29, 4  ;;  %s1333_s30 = int_to_ptr.vmem [resolvable:$true] %s201_s30 }
  0x12   : > { %s228_s8 = sshll.u32 %s1238_s7, 4  ;;  %s1239_s9 = smov [#allocation8]   ;;  %s1343_s8 = int_to_ptr.vmem [resolvable:$true] %s228_s8 }
  0x13   : > { %s1635_s28 = scalar_select %p1329_p3, 1, 0 }
  0x14   : > { %p875_p4 = pneg %p1329_p3  ;;  %s1345_s10 = sshll.u32 %s1239_s9, 4  ;;  %s215_s10 = int_to_ptr.vmem [resolvable:$true] %s1345_s10 }
  0x15   : > { %s1637_s1 = sld [smem:[#allocation17_spill]] }
  0x16   : > { %p1339_p5 = pnand %p875_p4, %p1324_p1 }
  0x18   : > { %p1355_p7 = pneg %p1339_p5 }
  0x1b   : > { %s987_s13 = scalar_lea.hbm %s1637_s1, 256 }
  0x1c   : > { %p988_p6 = scmp.ne.s32.totalorder %s1637_s1, %s987_s13  ;;  %p994_p10 = scmp.lt.u32.totalorder %s987_s13, %s1637_s1 }
  0x1e   : > { %p990_p8 = pnand %p1355_p7, %p988_p6 }
  0x20   : > { %p991_p9 = pneg %p990_p8 }
  0x22   : > { %p996_p11 = pnand %p994_p10, %p991_p9 }
  0x24   : > { %999 = shalt.err (!%p996_p11)
}
  0x25   : > { %s1000_s7 = scalar_lea.vmem %s1333_s30, 256  ;;  %p1008_p2 = scmp.lt.s32.totalorder %s1333_s30, %s1333_s30 }
  0x26   : > { %p1001_p12 = scmp.ne.s32.totalorder %s1333_s30, %s1000_s7  ;;  %p1009_p4 = scmp.lt.s32.totalorder %s1000_s7, %s1000_s7 }
  0x28   : > { %p1003_p13 = pnand %p1001_p12, %p1355_p7  ;;  %p1010_p6 = por %p1009_p4, %p1008_p2 }
  0x2a   : > { %p1004_p0 = pneg %p1003_p13 }
  0x2c   : > { %p1011_p8 = pnand %p1010_p6, %p1004_p0 }
  0x2e   : > { %1014 = shalt.err (!%p1011_p8)
}
  0x2f   : > { %s1240_s9 = smov 128   ;;  %s1241_s11 = smov 8  }
  0x30   : > { %878 = dma.hbm_to_vmem [thread:$0]  (!%p1339_p5), %s1637_s1, 256, %s1333_s30, [#allocation7], %s1240_s9, %s1240_s9, %s1241_s11  }
  0x31   : > { %s1015_s17 = scalar_lea.hbm %s1622_s3, 128 }
  0x32   : > { %p1016_p9 = scmp.ne.s32.totalorder %s1622_s3, %s1015_s17  ;;  %p1022_p12 = scmp.lt.u32.totalorder %s1015_s17, %s1622_s3 }
  0x34   : > { %p1018_p10 = pnand %p1016_p9, %p1355_p7 }
  0x36   : > { %p1019_p11 = pneg %p1018_p10 }
  0x38   : > { %p1024_p13 = pnand %p1022_p12, %p1019_p11 }
  0x3a   : > { %1027 = shalt.err (!%p1024_p13)
}
  0x3b   : > { %s1028_s30 = scalar_lea.vmem %s1343_s8, 128  ;;  %p1036_p6 = scmp.lt.s32.totalorder %s1343_s8, %s1343_s8 }
  0x3c   : > { %p1029_p0 = scmp.ne.s32.totalorder %s1343_s8, %s1028_s30  ;;  %p1037_p8 = scmp.lt.s32.totalorder %s1028_s30, %s1028_s30 }
  0x3e   : > { %p1031_p2 = pnand %p1029_p0, %p1355_p7  ;;  %p1038_p9 = por %p1037_p8, %p1036_p6 }
  0x40   : > { %p1032_p4 = pneg %p1031_p2 }
  0x42   : > { %p1039_p10 = pnand %p1038_p9, %p1032_p4 }
  0x44   : > { %1042 = shalt.err (!%p1039_p10)
}
  0x45   : > { %884 = dma.hbm_to_vmem [thread:$0]  (!%p1339_p5), %s1622_s3, 128, %s1343_s8, [#allocation10]  }
  0x46   : > { %s1639_s2 = sld [smem:[#allocation18_spill]] }
  0x4c   : > { %s1043_s14 = scalar_lea.hbm %s1639_s2, 256 }
  0x4d   : > { %p1044_p11 = scmp.ne.s32.totalorder %s1639_s2, %s1043_s14  ;;  %p1050_p0 = scmp.lt.u32.totalorder %s1043_s14, %s1639_s2 }
  0x4f   : > { %p1046_p12 = pnand %p1044_p11, %p1355_p7 }
  0x51   : > { %p1047_p13 = pneg %p1046_p12 }
  0x53   : > { %p1052_p2 = pnand %p1050_p0, %p1047_p13 }
  0x55   : > { %1055 = shalt.err (!%p1052_p2)
}
  0x56   : > { %s1056_s30 = scalar_lea.vmem %s215_s10, 256  ;;  %p1064_p9 = scmp.lt.s32.totalorder %s215_s10, %s215_s10 }
  0x57   : > { %p1057_p4 = scmp.ne.s32.totalorder %s215_s10, %s1056_s30  ;;  %p1065_p10 = scmp.lt.s32.totalorder %s1056_s30, %s1056_s30 }
  0x59   : > { %p1059_p6 = pnand %p1057_p4, %p1355_p7  ;;  %p1066_p3 = por %p1065_p10, %p1064_p9 }
  0x5b   : > { %p1060_p8 = pneg %p1059_p6 }
  0x5d   : > { %p1067_p1 = pnand %p1066_p3, %p1060_p8 }
  0x5f   : > { %1070 = shalt.err (!%p1067_p1)
}
  0x60   : > { %881 = dma.hbm_to_vmem [thread:$0]  (!%p1339_p5), %s1639_s2, 256, %s215_s10, [#allocation7], %s1240_s9, %s1240_s9, %s1241_s11  }
  0x61   : > { %s1242_s26 = smov [#allocation11]   ;;  %s1071_s15 = scalar_lea.hbm %s1623_s4, 128 }
  0x62   : > { %s239_s12 = sshll.u32 %s1242_s26, 4  ;;  %p1072_p1 = scmp.ne.s32.totalorder %s1623_s4, %s1071_s15  ;;  %s240_s12 = int_to_ptr.vmem [resolvable:$true] %s239_s12 }
  0x63   : > { %p1078_p12 = scmp.lt.u32.totalorder %s1071_s15, %s1623_s4 }
  0x64   : > { %p1074_p3 = pnand %p1072_p1, %p1355_p7 }
  0x66   : > { %p1075_p11 = pneg %p1074_p3 }
  0x68   : > { %p1080_p13 = pnand %p1078_p12, %p1075_p11 }
  0x6a   : > { %1083 = shalt.err (!%p1080_p13)
}
  0x6b   : > { %s1084_s10 = scalar_lea.vmem %s240_s12, 128  ;;  %p1092_p6 = scmp.lt.s32.totalorder %s240_s12, %s240_s12 }
  0x6c   : > { %p1085_p0 = scmp.ne.s32.totalorder %s240_s12, %s1084_s10  ;;  %p1093_p8 = scmp.lt.s32.totalorder %s1084_s10, %s1084_s10 }
  0x6e   : > { %p1087_p2 = pnand %p1085_p0, %p1355_p7  ;;  %p1094_p9 = por %p1093_p8, %p1092_p6 }
  0x70   : > { %p1088_p4 = pneg %p1087_p2 }
  0x72   : > { %p1095_p10 = pnand %p1094_p9, %p1088_p4 }
  0x74   : > { %1098 = shalt.err (!%p1095_p10)
}
  0x75   : > { %887 = dma.hbm_to_vmem [thread:$0]  (!%p1339_p5), %s1623_s4, 128, %s240_s12, [#allocation10]  }
  0x76   : > { %s822_s16 = sadd.s32 4294967294, %s1235_s25   ;;  %s38_s8 = sadd.s32 1, %s1227_s23 }
  0x77   : > { %p40_p7 = scmp.ge.s32.totalorder %s38_s8, 2  ;;  %s42_s6 = sadd.s32 1, %s1231_s24 }
  0x78   : > { %s51_s5 = sadd.s32 1, %s1215_s20  ;;  %p58_p1 = scmp.ne.s32.totalorder %s1215_s20, %s1211_s19 }
  0x79   : > { %s1660_s8 = smov (%p40_p7, %s38_s8), 0  ;;  %s1662_s6 = smov (!%p40_p7, %s42_s6), %s1231_s24 }
  0x7a   : > { %p59_p3 = scmp.eq.s32.totalorder %s1235_s25, 0  ;;  %p64_p11 = scmp.ne.s32.totalorder %s1211_s19, %s1207_s18 }
  0x7b   : > { %p44_p12 = scmp.ge.s32.totalorder %s1662_s6, 2  ;;  %s1640_s26 = sadd.s32 4294967295, %s1235_s25  }
  0x7c   : > { %p176_p13 = scmp.eq.s32.totalorder %s1640_s26, 3  ;;  %p1456_p5 = por %p59_p3, %p58_p1 }
  0x7d   : > { %p1642_p0 = scmp.ne.s32.totalorder %s1634_s27, 0  ;;  %s1664_s6 = smov (%p44_p12, %s1662_s6), 0 }
  0x7e   : > { %p1468_p4 = por %p176_p13, %p58_p1  ;;  %p182_p6 = scmp.eq.s32.totalorder %s822_s16, 3 }
  0x7f   : > { %p1462_p2 = por %p1642_p0, %p64_p11  ;;  %s46_s15 = ssub.s32 %s1231_s24, %s1664_s6 }
  0x80   : > { %s1644_s14 = scalar_select %p1468_p4, 1, 0 }
  0x81   : > { %p900_p8 = scmp.lt.s32.totalorder %s1235_s25, 4  ;;  %p49_p9 = scmp.eq.s32.totalorder %s46_s15, 0 }
  0x82   : > { %p1475_p10 = por %p182_p6, %p64_p11  ;;  %s250_s29 = sand.u32 1, %s1215_s20  }
  0x83   : > { %s852_s7 = sshll.u32 %s1231_s24, 8  ;;  %s829_s10 = sshll.u32 %s250_s29, 4 }
  0x84   : > { %s1645_s17 = scalar_select %p1475_p10, 1, 0 }
  0x85   : > { %s1482_s30 = scalar_select %p49_p9, %s1215_s20, %s51_s5  }
  0x86   : > { %s1487_s26 = scalar_lea.hbm %s1619_s0, %s852_s7  ;;  %s254_s16 = scalar_lea.vmem [#allocation3], %s829_s10 }
  0x87   : > { %s264_s15 = sshll.u32 %s254_s16, 4  ;;  %p1491_p7 = pnand %p900_p8, %p1456_p5  ;;  %s1495_s15 = int_to_ptr.vmem [resolvable:$true] %s264_s15 }
  0x88   : > { %s251_s5 = scalar_lea.sflag [#allocation4], %s250_s29  ;;  %s1099_s2 = scalar_lea.hbm %s1487_s26, 256 }
  0x89   : > { %p1100_p1 = scmp.ne.s32.totalorder %s1487_s26, %s1099_s2  ;;  %p1101_p3 = pneg %p1491_p7 }
  0x8a   : > { %s1104_s12 = scalar_lea.hbm %s1619_s0, 512  ;;  %p1105_p13 = scmp.lt.u32.totalorder %s1487_s26, %s1619_s0 }
  0x8b   : > { %p1102_p11 = pnand %p1101_p3, %p1100_p1  ;;  %p1106_p5 = scmp.lt.u32.totalorder %s1104_s12, %s1099_s2 }
  0x8c   : > { %p1108_p6 = scmp.lt.u32.totalorder %s1099_s2, %s1487_s26 }
  0x8d   : > { %p1103_p12 = pneg %p1102_p11  ;;  %p1107_p0 = por %p1106_p5, %p1105_p13 }
  0x8f   : > { %p1109_p8 = por %p1108_p6, %p1107_p0 }
  0x91   : > { %p1110_p9 = pnand %p1109_p8, %p1103_p12 }
  0x93   : > { %1113 = shalt.err (!%p1110_p9)
}
  0x94   : > { %s1114_s29 = scalar_lea.vmem %s1495_s15, 256  ;;  %s1243_s16 = smov [#allocation3]  }
  0x95   : > { %p1115_p1 = scmp.ne.s32.totalorder %s1495_s15, %s1114_s29  ;;  %s1119_s7 = sshll.u32 %s1243_s16, 4  ;;  %s1120_s7 = int_to_ptr.vmem [resolvable:$false] %s1119_s7 }
  0x96   : > { %s1121_s10 = scalar_lea.vmem %s1120_s7, 512  ;;  %p1122_p4 = scmp.lt.s32.totalorder %s1495_s15, %s1120_s7 }
  0x97   : > { %p1117_p11 = pnand %p1115_p1, %p1101_p3  ;;  %p1123_p13 = scmp.lt.s32.totalorder %s1121_s10, %s1114_s29 }
  0x99   : > { %p1118_p10 = pneg %p1117_p11  ;;  %p1124_p5 = por %p1123_p13, %p1122_p4 }
  0x9b   : > { %p1125_p0 = pnand %p1124_p5, %p1118_p10 }
  0x9d   : > { %1128 = shalt.err (!%p1125_p0)
}
  0x9e   : > { %891 = dma.hbm_to_vmem [thread:$0]  (!%p1491_p7), %s1487_s26, 256, %s1495_s15, %s251_s5  }
  0x9f   : > { %p1647_p12 = scmp.ne.s32.totalorder %s1635_s28, 0 }
  0xa0   : > { %s1525_s2 = sand.u32 (!%p1647_p12), 1, %s1211_s19  }
  0xa1   : > { %273 = sbr.rel (%p1647_p12) target bundleno = 1414 (0x586), region = 40  ;;  %s833_s12 = sshll.u32 (!%p1647_p12), %s1525_s2, 4 }
  0xa2   : > { %s276_s9 = scalar_lea.sflag (!%p1647_p12), [#allocation4], %s1525_s2  ;;  %s1529_s11 = scalar_lea.vmem (!%p1647_p12), [#allocation3], %s833_s12 }
  0xa8   : > { %1190 = dma.done.wait (%p1462_p2), %s276_s9, 256  }
  0xa9   : > { %1192 = vsyncadd (%p1462_p2), %s276_s9, 4294967040  ;;  %p1648_p4 = scmp.ne.s32.totalorder %s1634_s27, 0 }
  0xab   : > { %1194 = dma.done.wait (%p1648_p4), [#allocation7], 512  }
  0xac   : > { %1196 = vsyncadd (%p1648_p4), [#allocation7], 4294966784 }
  0xad   : > { %1198 = dma.done.wait (%p1648_p4), [#allocation10], 256  }
  0xae   : > { %1200 = vsyncadd (%p1648_p4), [#allocation10], 4294967040  ;;  %p326_p10 = scmp.eq.s32.totalorder %s1219_s21, 0  ;;  %s1544_s1 = scalar_lea.vmem [#allocation12], %s833_s12 }
  0xaf   : > { %vm332_vm0 = vcmask (%p326_p10), 64512   ;;  %v1244_v0 = vmov (%p326_p10), 0.0  }
  0xb0   : > { %331 = sbr.rel (!%p326_p10) target bundleno = 183 (0xb7), region = 64  ;;  %333 = vst.msk [vmem:[#allocation2] sm:$0xff] (%p326_p10), %vm332_vm0, %v1244_v0 }
  0xb7 PF: > { %p840_p2 = scmp.ne.s32.totalorder %s1219_s21, 0 }
  0xb8   : > { %v338_v1 = vld [vmem:[%s1529_s11 + $0x8] sm:$0xff] (!%p840_p2)  ;;  %v337_v2 = vld [vmem:[%s1529_s11] sm:$0xff] (!%p840_p2)  ;;  %vm353_vm1 = vcmask (!%p840_p2), 64512   ;;  %v1245_v4 = vmov (!%p840_p2), 0.0   ;;  %v1246_v6 = vmov (!%p840_p2), 0  }
  0xb9   : > { %336 = sbr.rel (%p840_p2) target bundleno = 625 (0x271), region = 68  ;;  %v339_v3 = vld [vmem:[#allocation6] sm:$0xff] (!%p840_p2)  ;;  %360 = vmatprep.subr.mxu0 (!%p840_p2), %v338_v1  ;;  %424 = vmatprep.mubr.f32.mxu0 (!%p840_p2), %v1245_v4  ;;  %v342_v5 = vld [vmem:[#allocation8 + $0x8] sm:$0xff] (!%p840_p2)  ;;  %v340_v7 = vld [vmem:[#allocation6 + $0x8] sm:$0xff] (!%p840_p2) }
  0xba   : > { %361 = vmatpush1.msra.mxu0 (!%p840_p2), %v337_v2  ;;  %981 = vset.pattern.permute.xlu0 (!%p840_p2), %v1246_v6  ;;  %v341_v8 = vld [vmem:[#allocation8] sm:$0xff] (!%p840_p2)  ;;  %v437_v19 = vld [vmem:[#allocation2] sm:$0xff] (!%p840_p2) }
  0xbb   : > { %841 = vmatmul.mubr.msk.f32.vlgmr.msra.gmra.mrb[0].mxu0 (!%p840_p2), %vm353_vm1, %v339_v3  ;;  %350 = vperm.xlu0 (!%p840_p2), %981, %v342_v5  }
  0xbc   : > { %430 = vmatprep.mubr.f32.mxu0 (!%p840_p2), %v1245_v4 }
  0xbf   : > { %842 = vmatmul.mubr.msk.f32.gmra.mrb[2].mxu0 (!%p840_p2), %vm353_vm1, %v340_v7  ;;  %345 = vperm.xlu0 (!%p840_p2), %981, %v341_v8  }
 0x13a   : > { %v351_v9 = vpop.permute.xlu0 %350 }
 0x13e   : > { %v346_v10 = vpop.permute.xlu0 %345 }
 0x18e   : > { %v426_v11 = vpop.f32.mrb[0].mxu0 }
 0x18f   : > { %v428_v12 = vpop.f32.mrb[1].mxu0  ;;  %v427_v18 = vadd.f32 %v426_v11, %v346_v10 }
 0x190   : > { %v429_v13 = vadd.f32 %v428_v12, %v346_v10 }
 0x192   : > { %v432_v14 = vpop.f32.mrb[2].mxu0  ;;  %502 = vmatprep.mubr.f32.mxu1 %v429_v13 }
 0x193   : > { %v434_v15 = vpop.f32.mrb[3].mxu0  ;;  %v433_v17 = vadd.f32 %v432_v14, %v351_v9 }
 0x194   : > { %v435_v16 = vadd.f32 %v434_v15, %v351_v9 }
 0x196   : > { %438 = vmatprep.subr.mxu1 %v435_v16 }
 0x197   : > { %439 = vmatpush1.xpose.msra.mxu1 %v433_v17 }
 0x19a   : > { %503 = vmatmul.mubr.f32.vlgmr.msra.gmra.mrb[0].mxu1 %v427_v18 }
 0x26d   : > { %v504_v20 = vpop.f32.mrb[0].mxu1 }
 0x26e   : > { %v508_v21 = vadd.f32 %v504_v20, %v437_v19  ;;  %v506_v22 = vpop.f32.mrb[1].mxu1 }
 0x270   : > { %509 = vst.msk [vmem:[#allocation2] sm:$0xff] %vm353_vm1, %v508_v21 }
 0x271 PF: > { %511 = sbr.rel (!%p326_p10) target bundleno = 948 (0x3b4), region = 72  ;;  %v513_v23 = vlaneseq (%p326_p10)  ;;  %vm517_vm2 = vcmask (%p326_p10), 64512  }
 0x273   : > { %v514_v25 = vand.u32 (%p326_p10), 127, %v513_v23 }
 0x275   : > { %vm515_vm3 = vcmp.lt.s32.totalorder (%p326_p10), %v514_v25, 4 }
 0x277   : > { %v512_v24 = vld [vmem:[#allocation2] sm:$0xff] (%p326_p10) }
 0x278   : > { %v516_v26 = vsel %vm515_vm3, %v512_v24, -1e+30 }
 0x279   : > { %v518_v27 = vsel %vm517_vm2, %v516_v26, -inf }
 0x27a   : > { %519 = vmax.xlane.f32.xlu0 %v518_v27 }
 0x307   : > { %v520_v28 = vpop.xlane.xlu0 %519 }
 0x308   : > { %v521_v29 = vsub.f32 %v516_v26, %v520_v28 }
 0x30a   : > { %v522_v30 = vmul.f32 1.442695, %v521_v29 }
 0x30c   : > { %982 = vpow2.f32 %v522_v30 }
 0x316   : > { %v983_v31 = vpop.eup %982 }
 0x317   : > { %v524_v32 = vsel %vm517_vm2, %v983_v31, 0.0 }
 0x318   : > { %525 = vadd.xlane.f32.xlu0 %v524_v32 }
 0x3a5   : > { %v526_v33 = vpop.xlane.xlu0 %525 }
 0x3a6   : > { %984 = vrcp.f32 %v526_v33 }
 0x3b0   : > { %v985_v34 = vpop.eup %984 }
 0x3b1   : > { %v528_v35 = vmul.f32 %v985_v34, %v983_v31 }
 0x3b3   : > { %529 = vst.msk [vmem:[#allocation2] sm:$0xff] %vm517_vm2, %v528_v35 }
 0x3b4 PF: > { %p843_p7 = scmp.ne.s32.totalorder %s1219_s21, 1 }
 0x3b5   : > { %v535_v36 = vld [vmem:[%s1529_s11 + $0x8] sm:$0xff] (!%p843_p7)  ;;  %v534_v37 = vld [vmem:[%s1529_s11] sm:$0xff] (!%p843_p7)  ;;  %vm543_vm4 = vcmask (!%p843_p7), 64512   ;;  %v1247_v39 = vmov (!%p843_p7), 0.0   ;;  %v1248_v41 = vmov (!%p843_p7), 0   ;;  %vm625_vm5 = vcmask (!%p843_p7), 1043456  }
 0x3b6   : > { %533 = sbr.rel (%p843_p7) target bundleno = 1388 (0x56c), region = 76  ;;  %v536_v38 = vld [vmem:[#allocation9] sm:$0xff] (!%p843_p7)  ;;  %547 = vmatprep.subr.mxu0 (!%p843_p7), %v535_v36  ;;  %611 = vmatprep.mubr.f32.mxu0 (!%p843_p7), %v1247_v39  ;;  %v537_v40 = vld [vmem:[#allocation11] sm:$0xff] (!%p843_p7) }
 0x3b7   : > { %548 = vmatpush1.msra.mxu0 (!%p843_p7), %v534_v37  ;;  %986 = vset.pattern.permute.xlu0 (!%p843_p7), %v1248_v41 }
 0x3b8   : > { %844 = vmatmul.mubr.msk.f32.vlgmr.msra.gmra.mrb[0].mxu0 (!%p843_p7), %vm543_vm4, %v536_v38  ;;  %540 = vperm.xlu0 (!%p843_p7), %986, %v537_v40  }
 0x3b9   : > { %664 = vmatprep.mubr.bf16.mxu1 (!%p843_p7), %v1248_v41 }
 0x3ba   : > { %v618_v48 = vld [vmem:[#allocation2] sm:$0xff] (!%p843_p7) }
 0x3bb   : > { %v619_v51 = vpack.c.bf16 (!%p843_p7), %v618_v48, %v618_v48 }
 0x437   : > { %v541_v42 = vpop.permute.xlu0 %540 }
 0x48b   : > { %v613_v43 = vpop.f32.mrb[0].mxu0 }
 0x48c   : > { %v614_v44 = vadd.f32 %v613_v43, %v541_v42  ;;  %v615_v45 = vpop.f32.mrb[1].mxu0 }
 0x48d   : > { %v616_v46 = vadd.f32 %v615_v45, %v541_v42 }
 0x48e   : > { %v620_v47 = vpack.c.bf16 %v614_v44, %v614_v44 }
 0x48f   : > { %v621_v49 = vpack.c.bf16 %v616_v46, %v616_v46 }
 0x490   : > { %v627_v50 = vsel %vm625_vm5, %v620_v47, 0 }
 0x491   : > { %845 = vmatprep.subr.msk.bf16.mxu1 %vm625_vm5, %v621_v49 }
 0x492   : > { %633 = vmatpush1.bf16.msra.mxu1 %v627_v50 }
 0x495   : > { %846 = vmatmul.mubr.msk.bf16.vlgmr.msra.gmra.mrb[0].mxu1 %vm543_vm4, %v619_v51 }
 0x568   : > { %v666_v52 = vpop.f32.mrb[0].mxu1 }
 0x569   : > { %673 = vst [vmem:[%s1544_s1] sm:$0xff] %v666_v52  ;;  %v668_v53 = vpop.f32.mrb[1].mxu1 }
 0x56a   : > { %674 = vst [vmem:[%s1544_s1 + $0x8] sm:$0xff] %v668_v53  ;;  %v670_v54 = vpop.f32.mrb[2].mxu1 }
 0x56b   : > { %v671_v55 = vpop.f32.mrb[3].mxu1 }
 0x56c PF: > { %s854_s21 = sshll.u32 %s1223_s22, 8  ;;  %s1649_s13 = sld [smem:[#allocation19_spill]] }
 0x56d   : > { %s693_s15 = sshll.u32 %s1544_s1, 4  ;;  %s676_s5 = scalar_lea.sflag [#allocation5], %s1525_s2  ;;  %s694_s15 = int_to_ptr.vmem [resolvable:$true] %s693_s15 }
 0x56e   : > { %s1129_s29 = scalar_lea.vmem %s694_s15, 256  ;;  %p1650_p6 = scmp.ne.s32.totalorder %s1644_s14, 0 }
 0x56f   : > { %p1130_p3 = scmp.ne.s32.totalorder %s694_s15, %s1129_s29  ;;  %s1249_s16 = smov [#allocation12]  }
 0x570   : > { %s1133_s7 = sshll.u32 %s1249_s16, 4  ;;  %s1134_s7 = int_to_ptr.vmem [resolvable:$false] %s1133_s7 }
 0x571   : > { %p1131_p8 = pnand %p1130_p3, %p1650_p6  ;;  %s1135_s10 = scalar_lea.vmem %s1134_s7, 512 }
 0x572   : > { %s1570_s26 = scalar_lea.hbm %s1649_s13, %s854_s21  ;;  %p1136_p1 = scmp.lt.s32.totalorder %s694_s15, %s1134_s7 }
 0x573   : > { %p1132_p9 = pneg %p1131_p8  ;;  %p1137_p11 = scmp.lt.s32.totalorder %s1135_s10, %s1129_s29 }
 0x575   : > { %p1138_p13 = por %p1137_p11, %p1136_p1 }
 0x577   : > { %p1139_p5 = pnand %p1138_p13, %p1132_p9 }
 0x579   : > { %1142 = shalt.err (!%p1139_p5)
}
 0x57a   : > { %s1143_s22 = scalar_lea.hbm %s1570_s26, 256  ;;  %s1147_s9 = scalar_lea.hbm %s1649_s13, 512 }
 0x57b   : > { %p1144_p0 = scmp.ne.s32.totalorder %s1570_s26, %s1143_s22  ;;  %p1148_p10 = scmp.lt.u32.totalorder %s1570_s26, %s1649_s13 }
 0x57c   : > { %p1149_p2 = scmp.lt.u32.totalorder %s1147_s9, %s1143_s22  ;;  %p1151_p3 = scmp.lt.u32.totalorder %s1143_s22, %s1570_s26 }
 0x57d   : > { %p1145_p12 = pnand %p1144_p0, %p1650_p6 }
 0x57e   : > { %p1150_p7 = por %p1149_p2, %p1148_p10 }
 0x57f   : > { %p1146_p4 = pneg %p1145_p12 }
 0x580   : > { %p1152_p8 = por %p1151_p3, %p1150_p7 }
 0x582   : > { %p1153_p9 = pnand %p1152_p8, %p1146_p4 }
 0x584   : > { %1156 = shalt.err (!%p1153_p9)
}
 0x585   : > { %873 = dma.vmem_to_hbm [thread:$0]  (%p1650_p6), %s694_s15, 256, %s1570_s26, %s676_s5  }
 0x586 PF: > { %p905_p1 = scmp.ge.s32.totalorder %s1235_s25, 2  ;;  %s705_s21 = sand.u32 1, %s1207_s18  }
 0x587   : > { %p1651_p11 = scmp.ne.s32.totalorder %s1645_s17, 0  ;;  %s706_s27 = scalar_lea.sflag [#allocation5], %s705_s21 }
 0x589   : > { %p893_p13 = pnand %p905_p1, %p1651_p11 }
 0x58b   : > { %1202 = dma.done.wait (!%p893_p13), %s706_s27, 256  }
 0x58c   : > { %1204 = vsyncadd (!%p893_p13), %s706_s27, 4294967040  ;;  %s23_s25 = sadd.s32 1, %s1235_s25   ;;  %s1652_s18 = smov %s1211_s19 }
 0x58d   : > { %p20_p5 = scmp.ge.s32.totalorder %s23_s25, 6   ;;  %s1653_s19 = smov %s1215_s20 }
 0x58e   : > { %s1654_s20 = smov %s1482_s30  ;;  %s1655_s21 = smov %s1227_s23 }
 0x58f   : > { %s1656_s22 = smov %s1231_s24  ;;  %s1657_s23 = smov %s1660_s8 }
 0x590   : > { %s1658_s24 = smov %s1664_s6  ;;  %22 = sbr.rel (!%p20_p5) target bundleno = 13 (0xd), region = 117 }
 0x597   :  { %711 = vsyncpa [#allocation4], 1 }
 0x598   :  { %713 = vsyncpa [#allocation4 + $0x1], 1 }
 0x599   :  { %714 = vsyncpa [#allocation7], 1 }
 0x59a   :  { %715 = vsyncpa [#allocation10], 1 }
 0x59b   :  { %716 = vsyncpa [#allocation5], 1 }
 0x59c   :  { %718 = vsyncpa [#allocation5 + $0x1], 1 }

</bundles_post_ra>
